<compile_context>
chip_gen: v7x
topology: tpu7x:2x2x1
jax: 0.10.0
libtpu: 0.0.40
codegen_flags: <defaults>
</compile_context>

<pallas_src>
import jax
import jax.numpy as jnp
from jax.experimental import pallas as pl
from jax.experimental.pallas import tpu as pltpu


def _apply_attention_kernel(lens_ref,                        # SMEM: [B] int32 question lengths
                            v_ref, q_ref, attenT_ref, cnt_ref,
                            wv_ref, bv_ref, wq_ref, bq_ref, wa_ref, ba_ref,
                            out_ref,
                            w_scratch):
    TB, num_obj, v_feat = v_ref.shape
    _, que_len, mid = q_ref.shape
    G = attenT_ref.shape[1]

    # ---- pre-pass (independent of the running q) ---------------------------
    # Fused lin_v: one (TB*num_obj, v_feat) @ (v_feat, G*mid) bf16 matmul,
    # one relu, f32 accumulation.
    vflat = v_ref[...].reshape(TB * num_obj, v_feat)                  # bf16
    vp_all = jnp.maximum(
        jnp.dot(vflat, wv_ref[...], preferred_element_type=jnp.float32)
        + bv_ref[...], 0.0)                                           # [TB*num_obj, G*mid] f32

    # W_g[b, j, m] = sum_i atten[b, g, i, j] * vp_g[b, i, m]
    # atten comes in pre-transposed ([..., j, i]) so this is a straight batched
    # dot on the MXU; results are staged in VMEM scratch (not live SSA values).
    A_T = attenT_ref[...]                                             # [TB, G, que_len, num_obj] bf16
    for g in range(G):
        vp_g = vp_all[:, g * mid:(g + 1) * mid]                       # 128-aligned lane slice
        vp_g = vp_g.reshape(TB, num_obj, mid).astype(jnp.bfloat16)
        w_scratch[g] = jnp.einsum('bji,bim->bjm', A_T[:, g], vp_g,
                                  preferred_element_type=jnp.float32)  # [TB, que_len, mid]

    # ---- sequential glimpse chain on the running q (unrolled over G) -------
    cnt_all = cnt_ref[...]                                            # [TB, G, mid] f32 (precomputed count_h)
    q_acc = q_ref[...]                                                # [TB, que_len, mid] f32
    for g in range(G):
        qp = jnp.maximum(
            jnp.dot(q_acc.reshape(TB * que_len, mid).astype(jnp.bfloat16),
                    wq_ref[g], preferred_element_type=jnp.float32)
            + bq_ref[g], 0.0).reshape(TB, que_len, mid)
        # h[b, m] = sum_j W_g[b, j, m] * qp[b, j, m]  (VPU multiply + sublane reduce)
        h = jnp.sum(w_scratch[g] * qp, axis=1)                        # [TB, mid]
        atten_h = jnp.dot(h.astype(jnp.bfloat16), wa_ref[g],
                          preferred_element_type=jnp.float32) + ba_ref[g]
        q_acc = q_acc + (atten_h + cnt_all[:, g])[:, None, :]

    # ---- epilogue: masked sum over que_len; mask built from SMEM lengths ----
    base = pl.program_id(0) * TB
    iota_j = jax.lax.broadcasted_iota(jnp.int32, (que_len, mid), 0)
    rows = []
    for t in range(TB):
        mask_t = (iota_j < lens_ref[base + t]).astype(jnp.float32)    # [que_len, mid]
        rows.append(jnp.sum(q_acc[t] * mask_t, axis=0, keepdims=True))
    out_ref[...] = jnp.concatenate(rows, axis=0).astype(out_ref.dtype)  # lane-dense [TB, mid] slab


def _num_tensorcores():
    """2 on v7x (2 TensorCores/chip), 1 on v5e/v6e; defaults to 1."""
    try:
        kind = jax.devices()[0].device_kind.lower()
    except Exception:
        return 1
    return 2 if ('7x' in kind or 'v7' in kind) else 1


def apply_attention(v, q, atten, count_embeds, q_lens, params, *, tb=None):
    """BAN ApplyAttention forward. q_lens: int32 [B] per-example question lengths."""
    B, num_obj, v_feat = v.shape
    _, que_len, mid = q.shape
    G = atten.shape[1]
    wv, bv, wq, bq, wa, ba, wc, bc = params

    # Implicit invariant of the torch module: `q = q + atten_h` broadcast
    # requires q_features == mid_features.
    assert q.shape[-1] == wa.shape[-1] == mid

    # Batch tile: one grid step per TensorCore.  v5e/v6e (1 TC) -> single grid
    # step (maximal MXU M-fill, no pipeline overhead).  Split across cores only
    # when each tile keeps >= 8 rows so the (tb, mid) output block stays
    # sublane-aligned.
    if tb is None:
        cores = _num_tensorcores()
        tb = (B // cores if (cores > 1 and B % cores == 0
                             and (B // cores) % 8 == 0) else B)
    assert B % tb == 0
    nb = B // tb

    # Hoist lin_count out of the kernel (it does not depend on the running q).
    count_h = jax.nn.relu(
        jnp.einsum('bgc,gcm->bgm', count_embeds, wc) + bc[:, 0][None])  # [B, G, mid] f32

    # Fuse the G lin_v weights into one (v_feat, G*mid) operand; pre-transpose
    # atten so the in-kernel W contraction needs no XLU transpose.  All MXU
    # operands are cast to bf16 (f32 accumulation happens in-kernel).
    bf = jnp.bfloat16
    wv_f = jnp.transpose(wv, (1, 0, 2)).reshape(v_feat, G * mid).astype(bf)
    bv_f = bv.reshape(1, G * mid).astype(jnp.float32)
    attenT = jnp.swapaxes(atten, 2, 3).astype(bf)          # [B, G, que_len, num_obj]
    v_bf = v.astype(bf)
    wq_bf = wq.astype(bf)
    wa_bf = wa.astype(bf)

    # Explicit VMEM budget: double-buffered activation tiles + (possibly
    # double-buffered) grid-invariant weight stacks + the W scratch, plus
    # headroom; capped at v7x's 64 MiB physical VMEM.
    f32b, bf16b = 4, 2
    act = 2 * (tb * num_obj * v_feat * bf16b
               + tb * que_len * mid * f32b
               + tb * G * que_len * num_obj * bf16b
               + tb * G * mid * f32b
               + tb * mid * f32b)
    wgt = 2 * (v_feat * G * mid * bf16b + G * mid * f32b
               + 2 * G * mid * mid * bf16b + 2 * G * mid * f32b)
    scr = G * tb * que_len * mid * f32b
    vmem_limit = max(32 << 20,
                     min(int(1.5 * (act + wgt + scr)) + (4 << 20), 64 << 20))

    out = pl.pallas_call(
        _apply_attention_kernel,
        out_shape=jax.ShapeDtypeStruct((B, mid), jnp.float32),
        grid_spec=pltpu.PrefetchScalarGridSpec(
            num_scalar_prefetch=1,                        # q_lens -> SMEM
            grid=(nb,),
            in_specs=[
                # per-batch-tile activations
                pl.BlockSpec((tb, num_obj, v_feat),     lambda b, lens: (b, 0, 0)),
                pl.BlockSpec((tb, que_len, mid),        lambda b, lens: (b, 0, 0)),
                pl.BlockSpec((tb, G, que_len, num_obj), lambda b, lens: (b, 0, 0, 0)),
                pl.BlockSpec((tb, G, mid),              lambda b, lens: (b, 0, 0)),
                # grid-invariant weight stacks: VMEM-resident across the grid
                pl.BlockSpec((v_feat, G * mid),         lambda b, lens: (0, 0)),
                pl.BlockSpec((1, G * mid),              lambda b, lens: (0, 0)),
                pl.BlockSpec((G, mid, mid),             lambda b, lens: (0, 0, 0)),
                pl.BlockSpec((G, 1, mid),               lambda b, lens: (0, 0, 0)),
                pl.BlockSpec((G, mid, mid),             lambda b, lens: (0, 0, 0)),
                pl.BlockSpec((G, 1, mid),               lambda b, lens: (0, 0, 0)),
            ],
            out_specs=pl.BlockSpec((tb, mid), lambda b, lens: (b, 0)),
            scratch_shapes=[pltpu.VMEM((G, tb, que_len, mid), jnp.float32)],
        ),
        compiler_params=pltpu.CompilerParams(
            dimension_semantics=("parallel",),
            vmem_limit_bytes=vmem_limit),
    )(q_lens, v_bf, q, attenT, count_h, wv_f, bv_f, wq_bf, bq, wa_bf, ba)
    return out


def reference(v, q, atten, count_embeds, q_mask, params):
    """Pure-JAX (f32) reference mirroring the PyTorch forward."""
    wv, bv, wq, bq, wa, ba, wc, bc = params
    G = atten.shape[1]
    for g in range(G):
        vp = jax.nn.relu(v @ wv[g] + bv[g])            # [B, num_obj, mid]
        qp = jax.nn.relu(q @ wq[g] + bq[g])            # [B, que_len, mid]
        A = atten[:, g]                                # [B, num_obj, que_len]
        h = jnp.einsum('bim,bij,bjm->bm', vp, A, qp)   # bilinear contraction
        atten_h = h @ wa[g] + ba[g]                    # no relu (lin_atten)
        count_h = jax.nn.relu(count_embeds[:, g] @ wc[g] + bc[g])
        q = q + atten_h[:, None, :] + count_h[:, None, :]
    q = q * q_mask[..., None]
    return q.sum(1)


if __name__ == "__main__":
    key = jax.random.PRNGKey(0)
    B, num_obj, que_len = 4, 8, 8
    v_features = 64
    q_features = mid_features = 128      # q_features must equal mid_features
    glimpses = 2
    C1 = num_obj + 1

    keys = jax.random.split(key, 8)
    v = jax.random.normal(keys[0], (B, num_obj, v_features), jnp.float32)
    q = jax.random.normal(keys[1], (B, que_len, q_features), jnp.float32)
    boxes = jax.random.uniform(keys[2], (B, 4, num_obj), dtype=jnp.float32)
    atten = jax.random.normal(keys[3], (B, glimpses, num_obj, que_len), jnp.float32)
    logits = jax.random.normal(keys[4], (B, glimpses, num_obj, que_len), jnp.float32)
    v_mask = jnp.ones((B, num_obj), jnp.float32)   # unused by forward (matches torch)
    q_lens = jnp.array([que_len, que_len - 2, que_len - 1, que_len - 3], jnp.int32)
    q_mask = (jnp.arange(que_len)[None, :] < q_lens[:, None]).astype(jnp.float32)

    # Deterministic parameters (weight_norm Linear == plain Linear at forward time).
    def init_w(k, shape, scale=0.1):
        return scale * jax.random.normal(k, shape, jnp.float32)

    wkeys = jax.random.split(keys[5], 8)
    wv = init_w(wkeys[0], (glimpses, v_features, mid_features))
    bv = init_w(wkeys[1], (glimpses, 1, mid_features))
    wq = init_w(wkeys[2], (glimpses, q_features, mid_features))
    bq = init_w(wkeys[3], (glimpses, 1, mid_features))
    wa = init_w(wkeys[4], (glimpses, mid_features, mid_features))
    ba = init_w(wkeys[5], (glimpses, 1, mid_features))
    wc = init_w(wkeys[6], (glimpses, C1, mid_features))
    bc = init_w(wkeys[7], (glimpses, 1, mid_features))
    params = (wv, bv, wq, bq, wa, ba, wc, bc)

    # TODO(synk): the real Counter module (IoU-based soft counting) is injected via
    # `count=` and is not defined in the reference; deterministic soft-one-hot stand-in.
    def count_stub(boxes_, att_max):
        c = jax.nn.sigmoid(att_max).sum(-1)                                   # [B]
        idx = jnp.arange(C1, dtype=jnp.float32)
        return jnp.maximum(0.0, 1.0 - jnp.abs(c[:, None] - idx[None, :]))     # [B, C1]

    count_embeds = jnp.stack(
        [count_stub(boxes, logits[:, g].max(axis=2)) for g in range(glimpses)],
        axis=1)                                                               # [B, G, C1]

    out = apply_attention(v, q, atten, count_embeds, q_lens, params)
    out = jax.block_until_ready(out)

    ref = reference(v, q, atten, count_embeds, q_mask, params)
    assert out.shape == (B, mid_features)
    # bf16 MXU operands vs. f32 reference: scale-normalized max-error check
    # (f32 atol/rtol=1e-4 no longer applies once operands are bf16).
    err = float(jnp.max(jnp.abs(out - ref)) / (jnp.max(jnp.abs(ref)) + 1e-6))
    assert err < 5e-2, f"normalized max error too large: {err}"
    print("KERNEL_OK")
</pallas_src>

<mosaic_0001>
module attributes {stable_mosaic.version = 11 : i64} {
  func.func @_apply_attention_kernel(%arg0: i32, %arg1: memref<4xi32, #tpu.memory_space<smem>>, %arg2: memref<4x8x64xbf16, #tpu.memory_space<vmem>>, %arg3: memref<4x8x128xf32, #tpu.memory_space<vmem>>, %arg4: memref<4x2x8x8xbf16, #tpu.memory_space<vmem>>, %arg5: memref<4x2x128xf32, #tpu.memory_space<vmem>>, %arg6: memref<64x256xbf16, #tpu.memory_space<vmem>>, %arg7: memref<1x256xf32, #tpu.memory_space<vmem>>, %arg8: memref<2x128x128xbf16, #tpu.memory_space<vmem>>, %arg9: memref<2x1x128xf32, #tpu.memory_space<vmem>>, %arg10: memref<2x128x128xbf16, #tpu.memory_space<vmem>>, %arg11: memref<2x1x128xf32, #tpu.memory_space<vmem>>, %arg12: memref<4x128xf32, #tpu.memory_space<vmem>>, %arg13: memref<2x4x8x128xf32, #tpu.memory_space<vmem>>) attributes {dimension_semantics = [#tpu.dimension_semantics<parallel>], iteration_bounds = array<i64: 1>, scalar_prefetch = 1 : i64, scratch_operands = 1 : i64, tpu.core_type = #tpu.core_type<tc>, window_params = [{transform_indices = @transform_0, window_bounds = array<i64: 4, 8, 64>}, {transform_indices = @transform_1, window_bounds = array<i64: 4, 8, 128>}, {transform_indices = @transform_2, window_bounds = array<i64: 4, 2, 8, 8>}, {transform_indices = @transform_3, window_bounds = array<i64: 4, 2, 128>}, {pipeline_mode = #tpu.pipeline_mode<synchronous>, transform_indices = @transform_4, window_bounds = array<i64: 64, 256>}, {pipeline_mode = #tpu.pipeline_mode<synchronous>, transform_indices = @transform_5, window_bounds = array<i64: 1, 256>}, {pipeline_mode = #tpu.pipeline_mode<synchronous>, transform_indices = @transform_6, window_bounds = array<i64: 2, 128, 128>}, {pipeline_mode = #tpu.pipeline_mode<synchronous>, transform_indices = @transform_7, window_bounds = array<i64: 2, 1, 128>}, {pipeline_mode = #tpu.pipeline_mode<synchronous>, transform_indices = @transform_8, window_bounds = array<i64: 2, 128, 128>}, {pipeline_mode = #tpu.pipeline_mode<synchronous>, transform_indices = @transform_9, window_bounds = array<i64: 2, 1, 128>}, {transform_indices = @transform_10, window_bounds = array<i64: 4, 128>}]} {
    %c0 = arith.constant 0 : index
    %c0_0 = arith.constant 0 : index
    %c0_1 = arith.constant 0 : index
    %0 = vector.load %arg2[%c0, %c0_0, %c0_1] : memref<4x8x64xbf16, #tpu.memory_space<vmem>>, vector<4x8x64xbf16>
    %1 = vector.shape_cast %0 : vector<4x8x64xbf16> to vector<32x64xbf16>
    %c0_2 = arith.constant 0 : index
    %c0_3 = arith.constant 0 : index
    %2 = vector.load %arg6[%c0_2, %c0_3] : memref<64x256xbf16, #tpu.memory_space<vmem>>, vector<64x256xbf16>
    %cst = arith.constant dense<0.000000e+00> : vector<32x256xf32>
    %3 = tpu.matmul %1, %2, %cst {dimension_numbers = #tpu.dot_dimension_numbers<[1], [0], [0], [1], [0, 0, 1, 1], [], []>} : vector<32x64xbf16>, vector<64x256xbf16>, vector<32x256xf32> -> vector<32x256xf32>
    %c0_4 = arith.constant 0 : index
    %c0_5 = arith.constant 0 : index
    %4 = vector.load %arg7[%c0_4, %c0_5] : memref<1x256xf32, #tpu.memory_space<vmem>>, vector<1x256xf32>
    %5 = vector.broadcast %4 : vector<1x256xf32> to vector<32x256xf32>
    %6 = arith.addf %3, %5 : vector<32x256xf32>
    %cst_6 = arith.constant 0.000000e+00 : f32
    %7 = vector.broadcast %cst_6 : f32 to vector<32x256xf32>
    %8 = arith.maximumf %6, %7 : vector<32x256xf32>
    %c0_7 = arith.constant 0 : index
    %c0_8 = arith.constant 0 : index
    %c0_9 = arith.constant 0 : index
    %c0_10 = arith.constant 0 : index
    %9 = vector.load %arg4[%c0_7, %c0_8, %c0_9, %c0_10] : memref<4x2x8x8xbf16, #tpu.memory_space<vmem>>, vector<4x2x8x8xbf16>
    %10 = vector.extract_strided_slice %8 {offsets = [0, 0], sizes = [32, 128], strides = [1, 1]} : vector<32x256xf32> to vector<32x128xf32>
    %11 = vector.shape_cast %10 : vector<32x128xf32> to vector<4x8x128xf32>
    %12 = arith.truncf %11 : vector<4x8x128xf32> to vector<4x8x128xbf16>
    %13 = vector.extract_strided_slice %9 {offsets = [0, 0, 0, 0], sizes = [4, 1, 8, 8], strides = [1, 1, 1, 1]} : vector<4x2x8x8xbf16> to vector<4x1x8x8xbf16>
    %14 = vector.shape_cast %13 : vector<4x1x8x8xbf16> to vector<4x8x8xbf16>
    "tpu.trace_start"() <{level = 10 : i32, message = "bji,bim->bjm"}> : () -> ()
    %cst_11 = arith.constant dense<0.000000e+00> : vector<4x8x128xf32>
    %15 = tpu.matmul %14, %12, %cst_11 {dimension_numbers = #tpu.dot_dimension_numbers<[2], [1], [1], [2], [0, 0, 0, 1, 1, 2], [0], [0]>} : vector<4x8x8xbf16>, vector<4x8x128xbf16>, vector<4x8x128xf32> -> vector<4x8x128xf32>
    "tpu.trace_stop"() : () -> ()
    %c0_12 = arith.constant 0 : index
    %c0_13 = arith.constant 0 : index
    %c0_14 = arith.constant 0 : index
    %c0_15 = arith.constant 0 : index
    %16 = vector.load %arg13[%c0_12, %c0_13, %c0_14, %c0_15] : memref<2x4x8x128xf32, #tpu.memory_space<vmem>>, vector<1x4x8x128xf32>
    %17 = vector.shape_cast %16 : vector<1x4x8x128xf32> to vector<4x8x128xf32>
    %18 = vector.shape_cast %15 : vector<4x8x128xf32> to vector<1x4x8x128xf32>
    tpu.vector_store %arg13[%c0_12, %c0_13, %c0_14, %c0_15], %18 {strides = array<i32>} : memref<2x4x8x128xf32, #tpu.memory_space<vmem>>, vector<1x4x8x128xf32>,
    %19 = vector.extract_strided_slice %8 {offsets = [0, 128], sizes = [32, 128], strides = [1, 1]} : vector<32x256xf32> to vector<32x128xf32>
    %20 = vector.shape_cast %19 : vector<32x128xf32> to vector<4x8x128xf32>
    %21 = arith.truncf %20 : vector<4x8x128xf32> to vector<4x8x128xbf16>
    %22 = vector.extract_strided_slice %9 {offsets = [0, 1, 0, 0], sizes = [4, 1, 8, 8], strides = [1, 1, 1, 1]} : vector<4x2x8x8xbf16> to vector<4x1x8x8xbf16>
    %23 = vector.shape_cast %22 : vector<4x1x8x8xbf16> to vector<4x8x8xbf16>
    "tpu.trace_start"() <{level = 10 : i32, message = "bji,bim->bjm"}> : () -> ()
    %cst_16 = arith.constant dense<0.000000e+00> : vector<4x8x128xf32>
    %24 = tpu.matmul %23, %21, %cst_16 {dimension_numbers = #tpu.dot_dimension_numbers<[2], [1], [1], [2], [0, 0, 0, 1, 1, 2], [0], [0]>} : vector<4x8x8xbf16>, vector<4x8x128xbf16>, vector<4x8x128xf32> -> vector<4x8x128xf32>
    "tpu.trace_stop"() : () -> ()
    %c1 = arith.constant 1 : index
    %c0_17 = arith.constant 0 : index
    %c0_18 = arith.constant 0 : index
    %c0_19 = arith.constant 0 : index
    %25 = vector.load %arg13[%c1, %c0_17, %c0_18, %c0_19] : memref<2x4x8x128xf32, #tpu.memory_space<vmem>>, vector<1x4x8x128xf32>
    %26 = vector.shape_cast %25 : vector<1x4x8x128xf32> to vector<4x8x128xf32>
    %27 = vector.shape_cast %24 : vector<4x8x128xf32> to vector<1x4x8x128xf32>
    tpu.vector_store %arg13[%c1, %c0_17, %c0_18, %c0_19], %27 {strides = array<i32>} : memref<2x4x8x128xf32, #tpu.memory_space<vmem>>, vector<1x4x8x128xf32>,
    %c0_20 = arith.constant 0 : index
    %c0_21 = arith.constant 0 : index
    %c0_22 = arith.constant 0 : index
    %28 = vector.load %arg5[%c0_20, %c0_21, %c0_22] : memref<4x2x128xf32, #tpu.memory_space<vmem>>, vector<4x2x128xf32>
    %c0_23 = arith.constant 0 : index
    %c0_24 = arith.constant 0 : index
    %c0_25 = arith.constant 0 : index
    %29 = vector.load %arg3[%c0_23, %c0_24, %c0_25] : memref<4x8x128xf32, #tpu.memory_space<vmem>>, vector<4x8x128xf32>
    %30 = vector.shape_cast %29 : vector<4x8x128xf32> to vector<32x128xf32>
    %31 = arith.truncf %30 : vector<32x128xf32> to vector<32x128xbf16>
    %c0_26 = arith.constant 0 : index
    %c0_27 = arith.constant 0 : index
    %c0_28 = arith.constant 0 : index
    %32 = vector.load %arg8[%c0_26, %c0_27, %c0_28] : memref<2x128x128xbf16, #tpu.memory_space<vmem>>, vector<1x128x128xbf16>
    %33 = vector.shape_cast %32 : vector<1x128x128xbf16> to vector<128x128xbf16>
    %cst_29 = arith.constant dense<0.000000e+00> : vector<32x128xf32>
    %34 = tpu.matmul %31, %33, %cst_29 {dimension_numbers = #tpu.dot_dimension_numbers<[1], [0], [0], [1], [0, 0, 1, 1], [], []>} : vector<32x128xbf16>, vector<128x128xbf16>, vector<32x128xf32> -> vector<32x128xf32>
    %c0_30 = arith.constant 0 : index
    %c0_31 = arith.constant 0 : index
    %c0_32 = arith.constant 0 : index
    %35 = vector.load %arg9[%c0_30, %c0_31, %c0_32] : memref<2x1x128xf32, #tpu.memory_space<vmem>>, vector<1x1x128xf32>
    %36 = vector.shape_cast %35 : vector<1x1x128xf32> to vector<1x128xf32>
    %37 = vector.broadcast %36 : vector<1x128xf32> to vector<32x128xf32>
    %38 = arith.addf %34, %37 : vector<32x128xf32>
    %cst_33 = arith.constant 0.000000e+00 : f32
    %39 = vector.broadcast %cst_33 : f32 to vector<32x128xf32>
    %40 = arith.maximumf %38, %39 : vector<32x128xf32>
    %41 = vector.shape_cast %40 : vector<32x128xf32> to vector<4x8x128xf32>
    %c0_34 = arith.constant 0 : index
    %c0_35 = arith.constant 0 : index
    %c0_36 = arith.constant 0 : index
    %c0_37 = arith.constant 0 : index
    %42 = vector.load %arg13[%c0_34, %c0_35, %c0_36, %c0_37] : memref<2x4x8x128xf32, #tpu.memory_space<vmem>>, vector<1x4x8x128xf32>
    %43 = vector.shape_cast %42 : vector<1x4x8x128xf32> to vector<4x8x128xf32>
    %44 = arith.mulf %43, %41 : vector<4x8x128xf32>
    %cst_38 = arith.constant dense<0.000000e+00> : vector<4x128xf32>
    %45 = vector.multi_reduction <add>, %44, %cst_38 [1] : vector<4x8x128xf32> to vector<4x128xf32>
    %46 = arith.truncf %45 : vector<4x128xf32> to vector<4x128xbf16>
    %c0_39 = arith.constant 0 : index
    %c0_40 = arith.constant 0 : index
    %c0_41 = arith.constant 0 : index
    %47 = vector.load %arg10[%c0_39, %c0_40, %c0_41] : memref<2x128x128xbf16, #tpu.memory_space<vmem>>, vector<1x128x128xbf16>
    %48 = vector.shape_cast %47 : vector<1x128x128xbf16> to vector<128x128xbf16>
    %cst_42 = arith.constant dense<0.000000e+00> : vector<4x128xf32>
    %49 = tpu.matmul %46, %48, %cst_42 {dimension_numbers = #tpu.dot_dimension_numbers<[1], [0], [0], [1], [0, 0, 1, 1], [], []>} : vector<4x128xbf16>, vector<128x128xbf16>, vector<4x128xf32> -> vector<4x128xf32>
    %c0_43 = arith.constant 0 : index
    %c0_44 = arith.constant 0 : index
    %c0_45 = arith.constant 0 : index
    %50 = vector.load %arg11[%c0_43, %c0_44, %c0_45] : memref<2x1x128xf32, #tpu.memory_space<vmem>>, vector<1x1x128xf32>
    %51 = vector.shape_cast %50 : vector<1x1x128xf32> to vector<1x128xf32>
    %52 = vector.broadcast %51 : vector<1x128xf32> to vector<4x128xf32>
    %53 = arith.addf %49, %52 : vector<4x128xf32>
    %54 = vector.extract_strided_slice %28 {offsets = [0, 0, 0], sizes = [4, 1, 128], strides = [1, 1, 1]} : vector<4x2x128xf32> to vector<4x1x128xf32>
    %55 = vector.shape_cast %54 : vector<4x1x128xf32> to vector<4x128xf32>
    %56 = arith.addf %53, %55 : vector<4x128xf32>
    %57 = vector.shape_cast %56 : vector<4x128xf32> to vector<4x1x128xf32>
    %58 = vector.broadcast %57 : vector<4x1x128xf32> to vector<4x8x128xf32>
    %59 = arith.addf %29, %58 : vector<4x8x128xf32>
    %60 = vector.shape_cast %59 : vector<4x8x128xf32> to vector<32x128xf32>
    %61 = arith.truncf %60 : vector<32x128xf32> to vector<32x128xbf16>
    %c1_46 = arith.constant 1 : index
    %c0_47 = arith.constant 0 : index
    %c0_48 = arith.constant 0 : index
    %62 = vector.load %arg8[%c1_46, %c0_47, %c0_48] : memref<2x128x128xbf16, #tpu.memory_space<vmem>>, vector<1x128x128xbf16>
    %63 = vector.shape_cast %62 : vector<1x128x128xbf16> to vector<128x128xbf16>
    %cst_49 = arith.constant dense<0.000000e+00> : vector<32x128xf32>
    %64 = tpu.matmul %61, %63, %cst_49 {dimension_numbers = #tpu.dot_dimension_numbers<[1], [0], [0], [1], [0, 0, 1, 1], [], []>} : vector<32x128xbf16>, vector<128x128xbf16>, vector<32x128xf32> -> vector<32x128xf32>
    %c1_50 = arith.constant 1 : index
    %c0_51 = arith.constant 0 : index
    %c0_52 = arith.constant 0 : index
    %65 = vector.load %arg9[%c1_50, %c0_51, %c0_52] : memref<2x1x128xf32, #tpu.memory_space<vmem>>, vector<1x1x128xf32>
    %66 = vector.shape_cast %65 : vector<1x1x128xf32> to vector<1x128xf32>
    %67 = vector.broadcast %66 : vector<1x128xf32> to vector<32x128xf32>
    %68 = arith.addf %64, %67 : vector<32x128xf32>
    %cst_53 = arith.constant 0.000000e+00 : f32
    %69 = vector.broadcast %cst_53 : f32 to vector<32x128xf32>
    %70 = arith.maximumf %68, %69 : vector<32x128xf32>
    %71 = vector.shape_cast %70 : vector<32x128xf32> to vector<4x8x128xf32>
    %c1_54 = arith.constant 1 : index
    %c0_55 = arith.constant 0 : index
    %c0_56 = arith.constant 0 : index
    %c0_57 = arith.constant 0 : index
    %72 = vector.load %arg13[%c1_54, %c0_55, %c0_56, %c0_57] : memref<2x4x8x128xf32, #tpu.memory_space<vmem>>, vector<1x4x8x128xf32>
    %73 = vector.shape_cast %72 : vector<1x4x8x128xf32> to vector<4x8x128xf32>
    %74 = arith.mulf %73, %71 : vector<4x8x128xf32>
    %cst_58 = arith.constant dense<0.000000e+00> : vector<4x128xf32>
    %75 = vector.multi_reduction <add>, %74, %cst_58 [1] : vector<4x8x128xf32> to vector<4x128xf32>
    %76 = arith.truncf %75 : vector<4x128xf32> to vector<4x128xbf16>
    %c1_59 = arith.constant 1 : index
    %c0_60 = arith.constant 0 : index
    %c0_61 = arith.constant 0 : index
    %77 = vector.load %arg10[%c1_59, %c0_60, %c0_61] : memref<2x128x128xbf16, #tpu.memory_space<vmem>>, vector<1x128x128xbf16>
    %78 = vector.shape_cast %77 : vector<1x128x128xbf16> to vector<128x128xbf16>
    %cst_62 = arith.constant dense<0.000000e+00> : vector<4x128xf32>
    %79 = tpu.matmul %76, %78, %cst_62 {dimension_numbers = #tpu.dot_dimension_numbers<[1], [0], [0], [1], [0, 0, 1, 1], [], []>} : vector<4x128xbf16>, vector<128x128xbf16>, vector<4x128xf32> -> vector<4x128xf32>
    %c1_63 = arith.constant 1 : index
    %c0_64 = arith.constant 0 : index
    %c0_65 = arith.constant 0 : index
    %80 = vector.load %arg11[%c1_63, %c0_64, %c0_65] : memref<2x1x128xf32, #tpu.memory_space<vmem>>, vector<1x1x128xf32>
    %81 = vector.shape_cast %80 : vector<1x1x128xf32> to vector<1x128xf32>
    %82 = vector.broadcast %81 : vector<1x128xf32> to vector<4x128xf32>
    %83 = arith.addf %79, %82 : vector<4x128xf32>
    %84 = vector.extract_strided_slice %28 {offsets = [0, 1, 0], sizes = [4, 1, 128], strides = [1, 1, 1]} : vector<4x2x128xf32> to vector<4x1x128xf32>
    %85 = vector.shape_cast %84 : vector<4x1x128xf32> to vector<4x128xf32>
    %86 = arith.addf %83, %85 : vector<4x128xf32>
    %87 = vector.shape_cast %86 : vector<4x128xf32> to vector<4x1x128xf32>
    %88 = vector.broadcast %87 : vector<4x1x128xf32> to vector<4x8x128xf32>
    %89 = arith.addf %59, %88 : vector<4x8x128xf32>
    %c4_i32 = arith.constant 4 : i32
    %90 = arith.muli %arg0, %c4_i32 : i32
    %91 = tpu.iota {dimensions = array<i32: 0>} : vector<8x128xi32>
    %c0_i32 = arith.constant 0 : i32
    %92 = arith.addi %90, %c0_i32 : i32
    %93 = arith.index_cast %92 : i32 to index
    %94 = memref.load %arg1[%93] : memref<4xi32, #tpu.memory_space<smem>>
    %95 = vector.broadcast %94 : i32 to vector<8x128xi32>
    %96 = arith.cmpi slt, %91, %95 : vector<8x128xi32>
    %97 = arith.extui %96 : vector<8x128xi1> to vector<8x128xi32>
    %98 = arith.sitofp %97 : vector<8x128xi32> to vector<8x128xf32>
    %99 = vector.extract_strided_slice %89 {offsets = [0, 0, 0], sizes = [1, 8, 128], strides = [1, 1, 1]} : vector<4x8x128xf32> to vector<1x8x128xf32>
    %100 = vector.shape_cast %99 : vector<1x8x128xf32> to vector<8x128xf32>
    %101 = arith.mulf %100, %98 : vector<8x128xf32>
    %cst_66 = arith.constant dense<0.000000e+00> : vector<128xf32>
    %102 = vector.multi_reduction <add>, %101, %cst_66 [0] : vector<8x128xf32> to vector<128xf32>
    %103 = vector.shape_cast %102 : vector<128xf32> to vector<1x128xf32>
    %c1_i32 = arith.constant 1 : i32
    %104 = arith.addi %90, %c1_i32 : i32
    %105 = arith.index_cast %104 : i32 to index
    %106 = memref.load %arg1[%105] : memref<4xi32, #tpu.memory_space<smem>>
    %107 = vector.broadcast %106 : i32 to vector<8x128xi32>
    %108 = arith.cmpi slt, %91, %107 : vector<8x128xi32>
    %109 = arith.extui %108 : vector<8x128xi1> to vector<8x128xi32>
    %110 = arith.sitofp %109 : vector<8x128xi32> to vector<8x128xf32>
    %111 = vector.extract_strided_slice %89 {offsets = [1, 0, 0], sizes = [1, 8, 128], strides = [1, 1, 1]} : vector<4x8x128xf32> to vector<1x8x128xf32>
    %112 = vector.shape_cast %111 : vector<1x8x128xf32> to vector<8x128xf32>
    %113 = arith.mulf %112, %110 : vector<8x128xf32>
    %cst_67 = arith.constant dense<0.000000e+00> : vector<128xf32>
    %114 = vector.multi_reduction <add>, %113, %cst_67 [0] : vector<8x128xf32> to vector<128xf32>
    %115 = vector.shape_cast %114 : vector<128xf32> to vector<1x128xf32>
    %c2_i32 = arith.constant 2 : i32
    %116 = arith.addi %90, %c2_i32 : i32
    %117 = arith.index_cast %116 : i32 to index
    %118 = memref.load %arg1[%117] : memref<4xi32, #tpu.memory_space<smem>>
    %119 = vector.broadcast %118 : i32 to vector<8x128xi32>
    %120 = arith.cmpi slt, %91, %119 : vector<8x128xi32>
    %121 = arith.extui %120 : vector<8x128xi1> to vector<8x128xi32>
    %122 = arith.sitofp %121 : vector<8x128xi32> to vector<8x128xf32>
    %123 = vector.extract_strided_slice %89 {offsets = [2, 0, 0], sizes = [1, 8, 128], strides = [1, 1, 1]} : vector<4x8x128xf32> to vector<1x8x128xf32>
    %124 = vector.shape_cast %123 : vector<1x8x128xf32> to vector<8x128xf32>
    %125 = arith.mulf %124, %122 : vector<8x128xf32>
    %cst_68 = arith.constant dense<0.000000e+00> : vector<128xf32>
    %126 = vector.multi_reduction <add>, %125, %cst_68 [0] : vector<8x128xf32> to vector<128xf32>
    %127 = vector.shape_cast %126 : vector<128xf32> to vector<1x128xf32>
    %c3_i32 = arith.constant 3 : i32
    %128 = arith.addi %90, %c3_i32 : i32
    %129 = arith.index_cast %128 : i32 to index
    %130 = memref.load %arg1[%129] : memref<4xi32, #tpu.memory_space<smem>>
    %131 = vector.broadcast %130 : i32 to vector<8x128xi32>
    %132 = arith.cmpi slt, %91, %131 : vector<8x128xi32>
    %133 = arith.extui %132 : vector<8x128xi1> to vector<8x128xi32>
    %134 = arith.sitofp %133 : vector<8x128xi32> to vector<8x128xf32>
    %135 = vector.extract_strided_slice %89 {offsets = [3, 0, 0], sizes = [1, 8, 128], strides = [1, 1, 1]} : vector<4x8x128xf32> to vector<1x8x128xf32>
    %136 = vector.shape_cast %135 : vector<1x8x128xf32> to vector<8x128xf32>
    %137 = arith.mulf %136, %134 : vector<8x128xf32>
    %cst_69 = arith.constant dense<0.000000e+00> : vector<128xf32>
    %138 = vector.multi_reduction <add>, %137, %cst_69 [0] : vector<8x128xf32> to vector<128xf32>
    %139 = vector.shape_cast %138 : vector<128xf32> to vector<1x128xf32>
    %140 = tpu.concatenate %103, %115, %127, %139 in 0 : vector<1x128xf32>, vector<1x128xf32>, vector<1x128xf32>, vector<1x128xf32> -> vector<4x128xf32>
    %c0_70 = arith.constant 0 : index
    %c0_71 = arith.constant 0 : index
    %141 = vector.load %arg12[%c0_70, %c0_71] : memref<4x128xf32, #tpu.memory_space<vmem>>, vector<4x128xf32>
    tpu.vector_store %arg12[%c0_70, %c0_71], %140 {strides = array<i32>} : memref<4x128xf32, #tpu.memory_space<vmem>>, vector<4x128xf32>,
    return
  }
  func.func @transform_0(%arg0: i32, %arg1: memref<4xi32, #tpu.memory_space<smem>>) -> (i32, i32, i32) {
    %c0_i32 = arith.constant 0 : i32
    %c0_i32_0 = arith.constant 0 : i32
    %c0_i32_1 = arith.constant 0 : i32
    return %arg0, %c0_i32, %c0_i32_0 : i32, i32, i32
  }
  func.func @transform_1(%arg0: i32, %arg1: memref<4xi32, #tpu.memory_space<smem>>) -> (i32, i32, i32) {
    %c0_i32 = arith.constant 0 : i32
    %c0_i32_0 = arith.constant 0 : i32
    %c0_i32_1 = arith.constant 0 : i32
    return %arg0, %c0_i32, %c0_i32_0 : i32, i32, i32
  }
  func.func @transform_2(%arg0: i32, %arg1: memref<4xi32, #tpu.memory_space<smem>>) -> (i32, i32, i32, i32) {
    %c0_i32 = arith.constant 0 : i32
    %c0_i32_0 = arith.constant 0 : i32
    %c0_i32_1 = arith.constant 0 : i32
    %c0_i32_2 = arith.constant 0 : i32
    return %arg0, %c0_i32, %c0_i32_0, %c0_i32_1 : i32, i32, i32, i32
  }
  func.func @transform_3(%arg0: i32, %arg1: memref<4xi32, #tpu.memory_space<smem>>) -> (i32, i32, i32) {
    %c0_i32 = arith.constant 0 : i32
    %c0_i32_0 = arith.constant 0 : i32
    %c0_i32_1 = arith.constant 0 : i32
    return %arg0, %c0_i32, %c0_i32_0 : i32, i32, i32
  }
  func.func @transform_4(%arg0: i32, %arg1: memref<4xi32, #tpu.memory_space<smem>>) -> (i32, i32) {
    %c0_i32 = arith.constant 0 : i32
    %c0_i32_0 = arith.constant 0 : i32
    %c0_i32_1 = arith.constant 0 : i32
    return %c0_i32, %c0_i32_0 : i32, i32
  }
  func.func @transform_5(%arg0: i32, %arg1: memref<4xi32, #tpu.memory_space<smem>>) -> (i32, i32) {
    %c0_i32 = arith.constant 0 : i32
    %c0_i32_0 = arith.constant 0 : i32
    %c0_i32_1 = arith.constant 0 : i32
    return %c0_i32, %c0_i32_0 : i32, i32
  }
  func.func @transform_6(%arg0: i32, %arg1: memref<4xi32, #tpu.memory_space<smem>>) -> (i32, i32, i32) {
    %c0_i32 = arith.constant 0 : i32
    %c0_i32_0 = arith.constant 0 : i32
    %c0_i32_1 = arith.constant 0 : i32
    %c0_i32_2 = arith.constant 0 : i32
    return %c0_i32, %c0_i32_0, %c0_i32_1 : i32, i32, i32
  }
  func.func @transform_7(%arg0: i32, %arg1: memref<4xi32, #tpu.memory_space<smem>>) -> (i32, i32, i32) {
    %c0_i32 = arith.constant 0 : i32
    %c0_i32_0 = arith.constant 0 : i32
    %c0_i32_1 = arith.constant 0 : i32
    %c0_i32_2 = arith.constant 0 : i32
    return %c0_i32, %c0_i32_0, %c0_i32_1 : i32, i32, i32
  }
  func.func @transform_8(%arg0: i32, %arg1: memref<4xi32, #tpu.memory_space<smem>>) -> (i32, i32, i32) {
    %c0_i32 = arith.constant 0 : i32
    %c0_i32_0 = arith.constant 0 : i32
    %c0_i32_1 = arith.constant 0 : i32
    %c0_i32_2 = arith.constant 0 : i32
    return %c0_i32, %c0_i32_0, %c0_i32_1 : i32, i32, i32
  }
  func.func @transform_9(%arg0: i32, %arg1: memref<4xi32, #tpu.memory_space<smem>>) -> (i32, i32, i32) {
    %c0_i32 = arith.constant 0 : i32
    %c0_i32_0 = arith.constant 0 : i32
    %c0_i32_1 = arith.constant 0 : i32
    %c0_i32_2 = arith.constant 0 : i32
    return %c0_i32, %c0_i32_0, %c0_i32_1 : i32, i32, i32
  }
  func.func @transform_10(%arg0: i32, %arg1: memref<4xi32, #tpu.memory_space<smem>>) -> (i32, i32) {
    %c0_i32 = arith.constant 0 : i32
    %c0_i32_0 = arith.constant 0 : i32
    return %arg0, %c0_i32 : i32, i32
  }
}

</mosaic_0001>

<bundles_post_ra>
// kernel: tpu_custom_call.1
= control target key start
LH: loop header
LB: loop body
LE: loop exit
PB: predicated region body
PF: predicated region fallthrough
CT: control target
= control target key end

     0   :  { %s2311_s0 = inlined_call_operand.hbm [shape: s32[4], index: 0, kind: input, shape index: {}]   ;;  %s2312_s1 = inlined_call_operand.hbm [shape: bf16[4,8,64], index: 1, kind: input, shape index: {}]   ;;  %s2313_s2 = inlined_call_operand.hbm [shape: f32[4,8,128], index: 2, kind: input, shape index: {}]   ;;  %s2314_s3 = inlined_call_operand.hbm [shape: bf16[4,2,8,8], index: 3, kind: input, shape index: {}]   ;;  %s2315_s4 = inlined_call_operand.vmem [shape: f32[4,2,128], index: 4, kind: input, shape index: {}]   ;;  %s2316_s5 = inlined_call_operand.hbm [shape: bf16[64,256], index: 5, kind: input, shape index: {}]   ;;  %s2317_s6 = inlined_call_operand.vmem [shape: f32[1,256], index: 6, kind: input, shape index: {}]   ;;  %s2318_s7 = inlined_call_operand.hbm [shape: bf16[2,128,128], index: 7, kind: input, shape index: {}]   ;;  %s2319_s8 = inlined_call_operand.vmem [shape: f32[2,1,128], index: 8, kind: input, shape index: {}]   ;;  %s2320_s9 = inlined_call_operand.hbm [shape: bf16[2,128,128], index: 9, kind: input, shape index: {}]   ;;  %s2321_s10 = inlined_call_operand.vmem [shape: f32[2,1,128], index: 10, kind: input, shape index: {}]   ;;  %s2322_s11 = inlined_call_operand.hbm [shape: f32[4,128], index: 11, kind: output, shape index: {}]  }
   0x1   :  { %s1754_s19 = scalar_lea.hbm %s2311_s0, 16 }
   0x2   :  { %p1755_p0 = scmp.ne.s32.totalorder %s2311_s0, %s1754_s19  ;;  %p1758_p1 = scmp.lt.u32.totalorder %s1754_s19, %s2311_s0 }
   0x4   :  { %p1760_p2 = pnand %p1758_p1, %p1755_p0 }
   0x6   :  { %1763 = shalt.err (!%p1760_p2)  }
   0x7   :  { %s1930_s24 = smov [#allocation4]  }
   0x8   :  { %17 = dma.hbm_to_smem %s2311_s0, 16, %s1930_s24, [#allocation3] }
   0x9   :  { %1918 = dma.done.wait [#allocation3], 16 }
   0xa   :  { %1919 = vsyncadd [#allocation3], 4294967280 }
   0xb   :  { %19 = sfence }
   0xc   :  { %20 = vsyncpa [#allocation6], 0 }
   0xd   :  { %21 = vsyncpa [#allocation9], 0 }
   0xe   :  { %22 = vsyncpa [#allocation12], 0 }
   0xf   :  { %23 = vsyncpa [#allocation15], 0 }
  0x10   :  { %24 = vsyncpa [#allocation7], 0  ;;  %s1931_s27 = smov [#allocation8]   ;;  %s1764_s12 = scalar_lea.hbm %s2313_s2, 512 }
  0x11   :  { %s42_s28 = sshll.u32 %s1931_s27, 4  ;;  %p1765_p3 = scmp.ne.s32.totalorder %s2313_s2, %s1764_s12  ;;  %s43_s28 = int_to_ptr.vmem [resolvable:$true] %s42_s28 }
  0x12   :  { %p1768_p4 = scmp.lt.u32.totalorder %s1764_s12, %s2313_s2 }
  0x14   :  { %p1770_p5 = pnand %p1768_p4, %p1765_p3 }
  0x16   :  { %1773 = shalt.err (!%p1770_p5)
}
  0x17   :  { %s1774_s16 = scalar_lea.vmem %s43_s28, 512  ;;  %p1779_p7 = scmp.lt.s32.totalorder %s43_s28, %s43_s28 }
  0x18   :  { %p1775_p6 = scmp.ne.s32.totalorder %s43_s28, %s1774_s16  ;;  %p1780_p8 = scmp.lt.s32.totalorder %s1774_s16, %s1774_s16 }
  0x1a   :  { %p1781_p9 = por %p1780_p8, %p1779_p7 }
  0x1c   :  { %p1782_p10 = pnand %p1781_p9, %p1775_p6 }
  0x1e   :  { %1785 = shalt.err (!%p1782_p10)
}
  0x1f   :  { %s1932_s17 = smov 128   ;;  %s1933_s18 = smov 8  }
  0x20   :  { %48 = dma.hbm_to_vmem [thread:$0]  %s2313_s2, 512, %s43_s28, [#allocation9], %s1932_s17, %s1932_s17, %s1933_s18  }
  0x21   :  { %s1934_s21 = smov [#allocation11]   ;;  %s1935_s23 = smov [#allocation5]  }
  0x22   :  { %s68_s22 = sshll.u32 %s1934_s21, 4  ;;  %s30_s24 = sshll.u32 %s1935_s23, 4  ;;  %s69_s22 = int_to_ptr.vmem [resolvable:$true] %s68_s22  ;;  %s31_s24 = int_to_ptr.vmem [resolvable:$true] %s30_s24 }
  0x23   :  { %s1786_s27 = scalar_lea.hbm %s2316_s5, 1024 }
  0x24   :  { %p1787_p11 = scmp.ne.s32.totalorder %s2316_s5, %s1786_s27  ;;  %p1790_p12 = scmp.lt.u32.totalorder %s1786_s27, %s2316_s5 }
  0x26   :  { %p1792_p13 = pnand %p1790_p12, %p1787_p11 }
  0x28   :  { %1795 = shalt.err (!%p1792_p13)
}
  0x29   :  { %s1796_s2 = scalar_lea.vmem %s69_s22, 1024  ;;  %p1801_p1 = scmp.lt.s32.totalorder %s69_s22, %s69_s22 }
  0x2a   :  { %p1797_p0 = scmp.ne.s32.totalorder %s69_s22, %s1796_s2  ;;  %p1802_p2 = scmp.lt.s32.totalorder %s1796_s2, %s1796_s2 }
  0x2c   :  { %p1803_p3 = por %p1802_p2, %p1801_p1 }
  0x2e   :  { %p1804_p4 = pnand %p1803_p3, %p1797_p0 }
  0x30   :  { %1807 = shalt.err (!%p1804_p4)
}
  0x31   :  { %74 = dma.hbm_to_vmem [thread:$0]  %s2316_s5, 1024, %s69_s22, [#allocation12], %s1932_s17, %s1932_s17, %s1933_s18  }
  0x32   :  { %s1808_s16 = scalar_lea.hbm %s2312_s1, 256 }
  0x33   :  { %p1809_p5 = scmp.ne.s32.totalorder %s2312_s1, %s1808_s16  ;;  %p1812_p6 = scmp.lt.u32.totalorder %s1808_s16, %s2312_s1 }
  0x35   :  { %p1814_p7 = pnand %p1812_p6, %p1809_p5 }
  0x37   :  { %1817 = shalt.err (!%p1814_p7)
}
  0x38   :  { %s1818_s25 = scalar_lea.vmem %s31_s24, 256  ;;  %p1823_p9 = scmp.lt.s32.totalorder %s31_s24, %s31_s24 }
  0x39   :  { %p1819_p8 = scmp.ne.s32.totalorder %s31_s24, %s1818_s25  ;;  %p1824_p10 = scmp.lt.s32.totalorder %s1818_s25, %s1818_s25 }
  0x3b   :  { %p1825_p11 = por %p1824_p10, %p1823_p9 }
  0x3d   :  { %p1826_p12 = pnand %p1825_p11, %p1819_p8 }
  0x3f   :  { %1829 = shalt.err (!%p1826_p12)
}
  0x40   :  { %s1936_s5 = smov 64   ;;  %s1937_s17 = smov 4  }
  0x41   :  { %36 = dma.hbm_to_vmem [thread:$0]  %s2312_s1, 256, %s31_s24, [#allocation6], %s1936_s5, %s1936_s5, %s1937_s17  }
  0x42   :  { %s1938_s26 = smov [#allocation10]   ;;  %s1939_s29 = smov [#allocation13]  }
  0x43   :  { %s54_s27 = sshll.u32 %s1938_s26, 4  ;;  %s82_s30 = sshll.u32 %s1939_s29, 4  ;;  %s55_s27 = int_to_ptr.vmem [resolvable:$true] %s54_s27  ;;  %s83_s30 = int_to_ptr.vmem [resolvable:$true] %s82_s30 }
  0x44   :  { %s1830_s2 = scalar_lea.hbm %s2314_s3, 512 }
  0x45   :  { %p1831_p13 = scmp.ne.s32.totalorder %s2314_s3, %s1830_s2  ;;  %p1834_p0 = scmp.lt.u32.totalorder %s1830_s2, %s2314_s3 }
  0x47   :  { %p1836_p1 = pnand %p1834_p0, %p1831_p13 }
  0x49   :  { %1839 = shalt.err (!%p1836_p1)
}
  0x4a   :  { %s1840_s1 = scalar_lea.vmem %s55_s27, 512  ;;  %p1845_p3 = scmp.lt.s32.totalorder %s55_s27, %s55_s27 }
  0x4b   :  { %p1841_p2 = scmp.ne.s32.totalorder %s55_s27, %s1840_s1  ;;  %p1846_p4 = scmp.lt.s32.totalorder %s1840_s1, %s1840_s1 }
  0x4d   :  { %p1847_p5 = por %p1846_p4, %p1845_p3 }
  0x4f   :  { %p1848_p6 = pnand %p1847_p5, %p1841_p2 }
  0x51   :  { %1851 = shalt.err (!%p1848_p6)
}
  0x52   :  { %60 = dma.hbm_to_vmem [thread:$0]  %s2314_s3, 512, %s55_s27, [#allocation9], %s1936_s5, %s1936_s5, %s1937_s17  }
  0x53   :  { %s1852_s21 = scalar_lea.hbm %s2318_s7, 2048 }
  0x54   :  { %p1853_p7 = scmp.ne.s32.totalorder %s2318_s7, %s1852_s21  ;;  %p1856_p8 = scmp.lt.u32.totalorder %s1852_s21, %s2318_s7 }
  0x56   :  { %p1858_p9 = pnand %p1856_p8, %p1853_p7 }
  0x58   :  { %1861 = shalt.err (!%p1858_p9)
}
  0x59   :  { %s1862_s26 = scalar_lea.vmem %s83_s30, 2048  ;;  %p1867_p11 = scmp.lt.s32.totalorder %s83_s30, %s83_s30 }
  0x5a   :  { %p1863_p10 = scmp.ne.s32.totalorder %s83_s30, %s1862_s26  ;;  %p1868_p12 = scmp.lt.s32.totalorder %s1862_s26, %s1862_s26 }
  0x5c   :  { %p1869_p13 = por %p1868_p12, %p1867_p11 }
  0x5e   :  { %p1870_p0 = pnand %p1869_p13, %p1863_p10 }
  0x60   :  { %1873 = shalt.err (!%p1870_p0)
}
  0x61   :  { %88 = dma.hbm_to_vmem [thread:$0]  %s2318_s7, 2048, %s83_s30, [#allocation12], %s1936_s5, %s1936_s5, %s1937_s17  }
  0x62   :  { %s1940_s29 = smov [#allocation14]   ;;  %s1874_s28 = scalar_lea.hbm %s2320_s9, 2048 }
  0x63   :  { %s96_s12 = sshll.u32 %s1940_s29, 4  ;;  %p1875_p1 = scmp.ne.s32.totalorder %s2320_s9, %s1874_s28  ;;  %s97_s12 = int_to_ptr.vmem [resolvable:$true] %s96_s12 }
  0x64   :  { %p1878_p2 = scmp.lt.u32.totalorder %s1874_s28, %s2320_s9 }
  0x66   :  { %p1880_p3 = pnand %p1878_p2, %p1875_p1 }
  0x68   :  { %1883 = shalt.err (!%p1880_p3)
}
  0x69   :  { %s1884_s24 = scalar_lea.vmem %s97_s12, 2048  ;;  %p1889_p5 = scmp.lt.s32.totalorder %s97_s12, %s97_s12 }
  0x6a   :  { %p1885_p4 = scmp.ne.s32.totalorder %s97_s12, %s1884_s24  ;;  %p1890_p6 = scmp.lt.s32.totalorder %s1884_s24, %s1884_s24 }
  0x6c   :  { %p1891_p7 = por %p1890_p6, %p1889_p5 }
  0x6e   :  { %p1892_p8 = pnand %p1891_p7, %p1885_p4 }
  0x70   :  { %1895 = shalt.err (!%p1892_p8)
}
  0x71   :  { %102 = dma.hbm_to_vmem [thread:$0]  %s2320_s9, 2048, %s97_s12, [#allocation15], %s1936_s5, %s1936_s5, %s1937_s17  }
  0x72   :  { %1920 = dma.done.wait [#allocation6], 256  }
  0x73   :  { %1921 = vsyncadd [#allocation6], 4294967040 }
  0x74   :  { %1922 = dma.done.wait [#allocation9], 1024  }
  0x75   :  { %1923 = vsyncadd [#allocation9], 4294966272 }
  0x76   :  { %1924 = dma.done.wait [#allocation12], 3072  }
  0x77   :  { %1925 = vsyncadd [#allocation12], 4294964224 }
  0x78   :  { %1926 = dma.done.wait [#allocation15], 2048  }
  0x79   :  { %1927 = vsyncadd [#allocation15], 4294965248  ;;  %v1941_v0 = vmov 0   ;;  %v1708_v1 = vld [vmem:[#allocation11 + $0x4] ss:$8 sps:$4 sm:$0xff]   ;;  %vm198_vm0 = vcmask 523264   ;;  %v138_v12 = vlaneseq }
  0x7a   :  { %237 = vmatprep.mubr.bf16.mxu0 %v1941_v0  ;;  %v1710_v2 = vld [vmem:[#allocation11] ss:$8 sps:$4 sm:$0xff]   ;;  %205 = vmatprep.subr.bf16.mxu0 %v1708_v1  ;;  %v1711_v3 = vld [vmem:[#allocation11 + $0x14] ss:$8 sps:$4 sm:$0xff]   ;;  %v1713_v4 = vld [vmem:[#allocation11 + $0x10] ss:$8 sps:$4 sm:$0xff]  }
  0x7b   :  { %206 = vmatpush1.bf16.msra.mxu0 %v1710_v2  ;;  %v1714_v5 = vld [vmem:[#allocation11 + $0x24] ss:$8 sps:$4 sm:$0xff]   ;;  %v1716_v6 = vld [vmem:[#allocation11 + $0x20] ss:$8 sps:$4 sm:$0xff]   ;;  %v1717_v7 = vld [vmem:[#allocation11 + $0x34] ss:$8 sps:$4 sm:$0xff]  }
  0x7c   :  { %207 = vmatprep.subr.bf16.mxu0 %v1711_v3  ;;  %v1719_v8 = vld [vmem:[#allocation11 + $0x30] ss:$8 sps:$4 sm:$0xff]   ;;  %v1942_v11 = vmov 0.0   ;;  %vm1943_vm1 = vmmov 0   ;;  %v2108_v13 = vshrl.u32 %v138_v12, 7  ;;  %vm282_vm2 = vcmask 1043456  }
  0x7d   :  { %v1720_v9 = vld [vmem:[#allocation5] sm:$0xff]   ;;  %v1721_v10 = vld [vmem:[#allocation5 + $0x8] sm:$0xff]   ;;  %1564 = vmatprep.subr.bf16.mxu1 %v1942_v11  ;;  %1566 = vmatprep.mubr.msk.bf16.mxu1 %vm1943_vm1, %v1942_v11  ;;  %v266_v35 = vld [vmem:[#allocation10] sm:$0xf]  ;;  %vm278_vm3 = vcmask 64512   ;;  %vm862_vm4 = vcmask 1041409  }
  0x7e   :  { %v2111_v14 = vsub.s32 0, %v2108_v13  ;;  %v136_v15 = vld [vmem:[%s2317_s6] sm:$0x3]  ;;  %v144_v16 = vsub.s32 1, %v2108_v13  ;;  %v267_v38 = vld [vmem:[#allocation10 + $0x4] sm:$0xf] }
  0x7f   :  { %208 = vmatpush1.bf16.msra.mxu0 %v1713_v4  ;;  %v1722_v46 = vld [vmem:[#allocation13] sm:$0xff]   ;;  %v268_v50 = vld [vmem:[#allocation10 + $0x8] sm:$0xf]  ;;  %v271_v53 = vld [vmem:[#allocation10 + $0x14] sm:$0xf]  ;;  %vm864_vm5 = vcmask 1042434  }
  0x80   :  { %209 = vmatprep.subr.bf16.mxu0 %v1714_v5  ;;  %v141_v17 = vrot.slane %v136_v15, %v2111_v14  ;;  %v2118_v18 = vrot.slane %v136_v15, %v144_v16  ;;  %v2135_v51 = vld [vmem:[#allocation8] sm:$0xff]  ;;  %v2137_v52 = vld [vmem:[#allocation8 + $0x8] sm:$0xff]  ;;  %v1724_v58 = vld [vmem:[#allocation13 + $0x10] sm:$0xff]   ;;  %vm866_vm6 = vcmask 1043459   ;;  %s1504_s29 = sld [smem:[#allocation4 + $0x1]]  ;;  %s1506_s2 = sld [smem:[#allocation4 + $0x2]] }
  0x81   :  { %v1723_v54 = vld [vmem:[#allocation13 + $0x8] sm:$0xff]   ;;  %v669_v57 = vpack.c.bf16 %v2137_v52, %v2135_v51  ;;  %v270_v61 = vld [vmem:[#allocation10 + $0x10] sm:$0xf]  ;;  %v1725_v62 = vld [vmem:[#allocation13 + $0x18] sm:$0xff]   ;;  %s1508_s28 = sld [smem:[#allocation4 + $0x3]]  ;;  %vm1420_vm11 = vcmask 1040384  }
  0x82   :  { %v1726_v1 = vld [vmem:[#allocation13 + $0x20] sm:$0xff]   ;;  %v272_v4 = vld [vmem:[#allocation10 + $0x18] sm:$0xf]  ;;  %v1727_v5 = vld [vmem:[#allocation13 + $0x28] sm:$0xff]   ;;  %vm1422_vm12 = vcmask 1041408   ;;  %vm1424_vm13 = vcmask 1042432  }
  0x83   :  { %210 = vmatpush1.bf16.msra.mxu0 %v1716_v6  ;;  %v1729_v12 = vld [vmem:[#allocation13 + $0x38] sm:$0xff]   ;;  %v2163_v16 = vld [vmem:[#allocation8 + $0x10] sm:$0xff] }
  0x84   :  { %211 = vmatprep.subr.bf16.mxu0 %v1717_v7 }
  0x87   :  { %212 = vmatpush1.bf16.msra.mxu0 %v1719_v8  ;;  %v1728_v8 = vld [vmem:[#allocation13 + $0x30] sm:$0xff]  }
  0x88   :  { %1588 = vmatprep.subr.bf16.mxu0 %v1942_v11 }
  0x8a   :  { %1455 = vmatmul.mubr.msk.bf16.vlgmr.msra.gmra.mrb[0].mxu0 %vm198_vm0, %v1720_v9 }
  0x8b   :  { %247 = vmatprep.mubr.bf16.mxu0 %v1941_v0 }
  0x92   :  { %1456 = vmatmul.mubr.msk.bf16.gmra.mrb[4].mxu0 %vm198_vm0, %v1721_v10  ;;  %v269_v10 = vld [vmem:[#allocation10 + $0xc] sm:$0xf] }
  0x93   :  { %1590 = vmatprep.mubr.msk.bf16.mxu0 %vm1943_vm1, %v1942_v11 }
 0x15d   :  { %v239_v19 = vpop.f32.mrb[0].mxu0 }
 0x15e   :  { %v240_v20 = vadd.f32 %v239_v19, %v141_v17  ;;  %v241_v21 = vpop.f32.mrb[1].mxu0  ;;  %v273_v19 = vld [vmem:[#allocation10 + $0x1c] sm:$0xf] }
 0x15f   :  { %v242_v22 = vadd.f32 %v241_v21, %v2118_v18  ;;  %v243_v23 = vpop.f32.mrb[2].mxu0  ;;  %v1731_v21 = vld [vmem:[#allocation14 + $0x8] sm:$0xff]  }
 0x160   :  { %v258_v24 = vmax.f32 %v240_v20, 0.0  ;;  %v244_v25 = vadd.f32 %v243_v23, %v141_v17  ;;  %v245_v26 = vpop.f32.mrb[3].mxu0  ;;  %v1730_v20 = vld [vmem:[#allocation14] sm:$0xff]   ;;  %v1733_v23 = vld [vmem:[#allocation14 + $0x18] sm:$0xff]  }
 0x161   :  { %v259_v27 = vmax.f32 %v242_v22, 0.0  ;;  %v246_v59 = vadd.f32 %v245_v26, %v2118_v18  ;;  %v1732_v22 = vld [vmem:[#allocation14 + $0x10] sm:$0xff]  }
 0x162   :  { %v274_v28 = vpack.c.bf16 %v258_v24, %v258_v24  ;;  %v260_v29 = vmax.f32 %v244_v25, 0.0  ;;  %v1734_v24 = vld [vmem:[#allocation14 + $0x20] sm:$0xff]   ;;  %v1735_v25 = vld [vmem:[#allocation14 + $0x28] sm:$0xff]   ;;  %v1736_v26 = vld [vmem:[#allocation14 + $0x30] sm:$0xff]  }
 0x163   :  { %v468_v30 = vpack.c.bf16 %v259_v27, %v259_v27  ;;  %v261_v63 = vmax.f32 %v246_v59, 0.0  ;;  %v1737_v27 = vld [vmem:[#allocation14 + $0x38] sm:$0xff]  }
 0x164   :  { %v275_v31 = vpack.c.bf16 %v260_v29, %v260_v29  ;;  %v284_v32 = vsel %vm282_vm2, %v274_v28, 0  ;;  %v1738_v28 = vld [vmem:[#allocation13 + $0x40] sm:$0xff]   ;;  %v1739_v29 = vld [vmem:[#allocation13 + $0x48] sm:$0xff]  }
 0x165   :  { %v249_v33 = vpop.f32.mrb[4].mxu0  ;;  %1565 = vmatpush3.bf16.msra.mxu1 %v284_v32  ;;  %v476_v34 = vsel %vm282_vm2, %v468_v30, 0  ;;  %v469_v2 = vpack.c.bf16 %v261_v63, %v261_v63  ;;  %v1740_v30 = vld [vmem:[#allocation13 + $0x50] sm:$0xff]  }
 0x166   :  { %v250_v36 = vadd.f32 %v249_v33, %v141_v17  ;;  %v251_v37 = vpop.f32.mrb[5].mxu0  ;;  %1589 = vmatpush3.bf16.msra.mxu0 %v476_v34  ;;  %1570 = vmatprep.subr.bf16.mxu1 %v1942_v11  ;;  %v330_v42 = vsel %vm282_vm2, %v275_v31, 0  ;;  %v1741_v31 = vld [vmem:[#allocation13 + $0x58] sm:$0xff]  }
 0x167   :  { %v252_v39 = vadd.f32 %v251_v37, %v2118_v18  ;;  %v253_v40 = vpop.f32.mrb[6].mxu0  ;;  %1600 = vmatprep.subr.bf16.mxu0 %v1942_v11  ;;  %v522_v7 = vsel %vm282_vm2, %v469_v2, 0 }
 0x168   :  { %v262_v41 = vmax.f32 %v250_v36, 0.0  ;;  %1567 = vmatmul.mubr.msk.bf16.vlgmr.msra.gmra.mrb[0].mxu1 %vm278_vm3, %v266_v35  ;;  %v255_v43 = vpop.f32.mrb[7].mxu0  ;;  %v254_v48 = vadd.f32 %v253_v40, %v141_v17  ;;  %v2165_v17 = vld [vmem:[#allocation8 + $0x18] sm:$0xff] }
 0x169   :  { %v263_v44 = vmax.f32 %v252_v39, 0.0  ;;  %1571 = vmatpush3.bf16.msra.mxu1 %v330_v42  ;;  %1591 = vmatmul.mubr.msk.bf16.vlgmr.msra.gmra.mrb[8].mxu0 %vm278_vm3, %v267_v38  ;;  %v256_v3 = vadd.f32 %v255_v43, %v2118_v18  ;;  %v670_v18 = vpack.c.bf16 %v2165_v17, %v2163_v16 }
 0x16a   :  { %1572 = vmatprep.mubr.msk.bf16.mxu1 %vm1943_vm1, %v1942_v11  ;;  %1602 = vmatprep.mubr.msk.bf16.mxu0 %vm1943_vm1, %v1942_v11  ;;  %v276_v47 = vpack.c.bf16 %v262_v41, %v262_v41  ;;  %v264_v55 = vmax.f32 %v254_v48, 0.0 }
 0x16b   :  { %v470_v45 = vpack.c.bf16 %v263_v44, %v263_v44  ;;  %1576 = vmatprep.subr.bf16.mxu1 %v1942_v11  ;;  %v265_v6 = vmax.f32 %v256_v3, 0.0 }
 0x16c   :  { %v376_v56 = vsel %vm282_vm2, %v276_v47, 0  ;;  %v277_v60 = vpack.c.bf16 %v264_v55, %v264_v55 }
 0x16d   :  { %v568_v49 = vsel %vm282_vm2, %v470_v45, 0  ;;  %v471_v9 = vpack.c.bf16 %v265_v6, %v265_v6 }
 0x16e   :  { %1601 = vmatpush3.bf16.msra.mxu0 %v568_v49  ;;  %v422_v0 = vsel %vm282_vm2, %v277_v60, 0 }
 0x16f   :  { %1612 = vmatprep.subr.bf16.mxu0 %v1722_v46  ;;  %v614_v15 = vsel %vm282_vm2, %v471_v9, 0 }
 0x170   :  { %1573 = vmatmul.mubr.msk.bf16.vlgmr.msra.gmra.mrb[4].mxu1 %vm278_vm3, %v268_v50 }
 0x171   :  { %1603 = vmatmul.mubr.msk.bf16.vlgmr.msra.gmra.mrb[12].mxu0 %vm278_vm3, %v271_v53  ;;  %1577 = vmatpush3.bf16.msra.mxu1 %v376_v56 }
 0x172   :  { %1613 = vmatpush3.bf16.msra.mxu0 %v1722_v46  ;;  %1578 = vmatprep.mubr.msk.bf16.mxu1 %vm1943_vm1, %v1942_v11 }
 0x173   :  { %1614 = vmatprep.subr.bf16.mxu0 %v1723_v54  ;;  %1582 = vmatprep.subr.bf16.mxu1 %v1942_v11 }
 0x174   :  { %1628 = vmatprep.mubr.bf16.mxu0 %v669_v57 }
 0x176   :  { %1615 = vmatpush3.bf16.msra.mxu0 %v1723_v54 }
 0x177   :  { %1616 = vmatprep.subr.bf16.mxu0 %v1724_v58 }
 0x178   :  { %1579 = vmatmul.mubr.msk.bf16.vlgmr.msra.gmra.mrb[8].mxu1 %vm278_vm3, %v270_v61 }
 0x179   :  { %1583 = vmatpush3.bf16.msra.mxu1 %v422_v0  ;;  %1584 = vmatprep.mubr.msk.bf16.mxu1 %vm1943_vm1, %v1942_v11 }
 0x17a   :  { %1617 = vmatpush3.bf16.msra.mxu0 %v1724_v58  ;;  %1594 = vmatprep.subr.bf16.mxu1 %v1942_v11 }
 0x17b   :  { %1618 = vmatprep.subr.bf16.mxu0 %v1725_v62 }
 0x17e   :  { %1619 = vmatpush3.bf16.msra.mxu0 %v1725_v62  ;;  %v1465_v62 = vld [vmem:[%s2319_s8] ss:$0 sm:$0xff] }
 0x17f   :  { %1620 = vmatprep.subr.bf16.mxu0 %v1726_v1 }
 0x180   :  { %1585 = vmatmul.mubr.msk.bf16.vlgmr.msra.gmra.mrb[12].mxu1 %vm278_vm3, %v272_v4 }
 0x181   :  { %1595 = vmatpush3.bf16.msra.mxu1 %v522_v7  ;;  %1596 = vmatprep.mubr.msk.bf16.mxu1 %vm1943_vm1, %v1942_v11 }
 0x182   :  { %1621 = vmatpush3.bf16.msra.mxu0 %v1726_v1  ;;  %1606 = vmatprep.subr.bf16.mxu1 %v1942_v11 }
 0x183   :  { %1622 = vmatprep.subr.bf16.mxu0 %v1727_v5 }
 0x186   :  { %1623 = vmatpush3.bf16.msra.mxu0 %v1727_v5 }
 0x187   :  { %1624 = vmatprep.subr.bf16.mxu0 %v1728_v8 }
 0x188   :  { %1597 = vmatmul.mubr.msk.bf16.vlgmr.msra.gmra.mrb[16].mxu1 %vm278_vm3, %v269_v10 }
 0x189   :  { %1607 = vmatpush3.bf16.msra.mxu1 %v614_v15  ;;  %1608 = vmatprep.mubr.msk.bf16.mxu1 %vm1943_vm1, %v1942_v11 }
 0x18a   :  { %1625 = vmatpush3.bf16.msra.mxu0 %v1728_v8  ;;  %1632 = vmatprep.subr.bf16.mxu1 %v1942_v11 }
 0x18b   :  { %1626 = vmatprep.subr.bf16.mxu0 %v1729_v12 }
 0x18e   :  { %1627 = vmatpush3.bf16.msra.mxu0 %v1729_v12 }
 0x18f   :  { %1652 = vmatprep.subr.bf16.mxu0 %v1738_v28 }
 0x190   :  { %1609 = vmatmul.mubr.msk.bf16.vlgmr.msra.gmra.mrb[20].mxu1 %vm278_vm3, %v273_v19 }
 0x191   :  { %1629 = vmatmul.mubr.bf16.vlgmr.msra.gmra.mrb[16].mxu0 %v670_v18  ;;  %1648 = vmatprep.mubr.msk.bf16.mxu1 %vm1943_vm1, %v1942_v11 }
 0x192   :  { %1633 = vmatpush3.bf16.msra.mxu1 %v1730_v20  ;;  %1653 = vmatpush3.bf16.msra.mxu0 %v1738_v28 }
 0x193   :  { %1634 = vmatprep.subr.bf16.mxu1 %v1942_v11  ;;  %1654 = vmatprep.subr.bf16.mxu0 %v1739_v29 }
 0x196   :  { %1635 = vmatpush3.bf16.msra.mxu1 %v1731_v21  ;;  %1655 = vmatpush3.bf16.msra.mxu0 %v1739_v29 }
 0x197   :  { %1636 = vmatprep.subr.bf16.mxu1 %v1942_v11  ;;  %1656 = vmatprep.subr.bf16.mxu0 %v1740_v30 }
 0x19a   :  { %1637 = vmatpush3.bf16.msra.mxu1 %v1732_v22  ;;  %1657 = vmatpush3.bf16.msra.mxu0 %v1740_v30 }
 0x19b   :  { %1638 = vmatprep.subr.bf16.mxu1 %v1942_v11  ;;  %1658 = vmatprep.subr.bf16.mxu0 %v1741_v31 }
 0x19e   :  { %1639 = vmatpush3.bf16.msra.mxu1 %v1733_v23  ;;  %1659 = vmatpush3.bf16.msra.mxu0 %v1741_v31 }
 0x19f   :  { %1640 = vmatprep.subr.bf16.mxu1 %v1942_v11 }
 0x1a2   :  { %1641 = vmatpush3.bf16.msra.mxu1 %v1734_v24 }
 0x1a3   :  { %1642 = vmatprep.subr.bf16.mxu1 %v1942_v11 }
 0x1a6   :  { %1643 = vmatpush3.bf16.msra.mxu1 %v1735_v25 }
 0x1a7   :  { %1644 = vmatprep.subr.bf16.mxu1 %v1942_v11 }
 0x1aa   :  { %1645 = vmatpush3.bf16.msra.mxu1 %v1736_v26 }
 0x1ab   :  { %1646 = vmatprep.subr.bf16.mxu1 %v1942_v11 }
 0x1ae   :  { %1647 = vmatpush3.bf16.msra.mxu1 %v1737_v27 }
 0x1af   :  { %1672 = vmatprep.subr.bf16.mxu1 %v1942_v11 }
 0x23b   :  { %v320_v32 = vpop.f32.mrb[0].mxu1 }
 0x23c   :  { %v2181_v33 = vpop.f32.mrb[8].mxu0  ;;  %v1568_v34 = vpop.f32.mrb[1].mxu1 }
 0x23d   :  { %v1592_v35 = vpop.f32.mrb[9].mxu0  ;;  %v323_v36 = vpop.f32.mrb[2].mxu1 }
 0x23e   :  { %v515_v37 = vpop.f32.mrb[10].mxu0  ;;  %v1569_v38 = vpop.f32.mrb[3].mxu1 }
 0x23f   :  { %v1593_v39 = vpop.f32.mrb[11].mxu0 }
 0x243   :  { %v366_v40 = vpop.f32.mrb[4].mxu1 }
 0x244   :  { %v2183_v41 = vpop.f32.mrb[12].mxu0  ;;  %v1574_v42 = vpop.f32.mrb[5].mxu1 }
 0x245   :  { %v1604_v43 = vpop.f32.mrb[13].mxu0  ;;  %v369_v44 = vpop.f32.mrb[6].mxu1 }
 0x246   :  { %v607_v45 = vpop.f32.mrb[14].mxu0  ;;  %v1575_v46 = vpop.f32.mrb[7].mxu1 }
 0x247   :  { %v1605_v47 = vpop.f32.mrb[15].mxu0 }
 0x24b   :  { %v412_v48 = vpop.f32.mrb[8].mxu1 }
 0x24c   :  { %v1580_v49 = vpop.f32.mrb[9].mxu1 }
 0x24d   :  { %v415_v50 = vpop.f32.mrb[10].mxu1 }
 0x24e   :  { %v1581_v53 = vpop.f32.mrb[11].mxu1 }
 0x253   :  { %v458_v54 = vpop.f32.mrb[12].mxu1 }
 0x254   :  { %v1586_v55 = vpop.f32.mrb[13].mxu1 }
 0x255   :  { %v461_v56 = vpop.f32.mrb[14].mxu1 }
 0x256   :  { %v1587_v57 = vpop.f32.mrb[15].mxu1 }
 0x25b   :  { %v2185_v58 = vpop.f32.mrb[16].mxu1 }
 0x25c   :  { %v1598_v59 = vpop.f32.mrb[17].mxu1 }
 0x25d   :  { %v561_v60 = vpop.f32.mrb[18].mxu1 }
 0x25e   :  { %v1599_v61 = vpop.f32.mrb[19].mxu1 }
 0x263   :  { %v2195_v61 = vpop.f32.mrb[20].mxu1 }
 0x264   :  { %v1630_v63 = vpop.f32.mrb[16].mxu0 }
 0x265   :  { %v785_v0 = vadd.f32 %v1630_v63, %v1465_v62  ;;  %v776_v1 = vpop.f32.mrb[17].mxu0 }
 0x266   :  { %v777_v2 = vadd.f32 %v1465_v62, %v776_v1  ;;  %v1631_v3 = vpop.f32.mrb[18].mxu0  ;;  %v1742_v1 = vld [vmem:[#allocation13 + $0x60] sm:$0xff]  }
 0x267   :  { %v793_v4 = vmax.f32 %v785_v0, 0.0  ;;  %v788_v5 = vadd.f32 %v1631_v3, %v1465_v62  ;;  %v779_v6 = vpop.f32.mrb[19].mxu0  ;;  %1660 = vmatprep.subr.bf16.mxu0 %v1742_v1  ;;  %v1744_v3 = vld [vmem:[#allocation13 + $0x70] sm:$0xff]  }
 0x268   :  { %v791_v7 = vmax.f32 %v777_v2, 0.0  ;;  %v780_v8 = vadd.f32 %v1465_v62, %v779_v6  ;;  %v1610_v62 = vpop.f32.mrb[21].mxu1  ;;  %1661 = vmatpush3.bf16.msra.mxu0 %v1742_v1  ;;  %v1743_v2 = vld [vmem:[#allocation13 + $0x68] sm:$0xff]   ;;  %v2205_v6 = vld [vmem:[%s2315_s4 + $0x4] sm:$0x3] }
 0x269   :  { %v794_v9 = vmax.f32 %v788_v5, 0.0  ;;  %v801_v10 = vmul.f32 %v793_v4, %v412_v48  ;;  %v653_v63 = vpop.f32.mrb[22].mxu1  ;;  %1662 = vmatprep.subr.bf16.mxu0 %v1743_v2  ;;  %v1745_v4 = vld [vmem:[#allocation13 + $0x78] sm:$0xff]   ;;  %v2200_v5 = vld [vmem:[%s2315_s4 + $0x2] sm:$0x3] }
 0x26a   :  { %v799_v12 = vmul.f32 %v791_v7, %v320_v32  ;;  %v792_v15 = vmax.f32 %v780_v8, 0.0  ;;  %v1611_v0 = vpop.f32.mrb[23].mxu1  ;;  %v962_v7 = vrot.slane %v2200_v5, 7  ;;  %v2211_v8 = vld [vmem:[%s2315_s4] sm:$0x3] }
 0x26b   :  { %v815_v18 = vrot.slane %v801_v10, 4  ;;  %v802_v19 = vmul.f32 %v794_v9, %v458_v54  ;;  %v2216_v9 = vld [vmem:[%s2315_s4 + $0x6] sm:$0x3] }
 0x26c   :  { %v803_v20 = vrot.slane %v799_v12, 4  ;;  %v800_v21 = vmul.f32 %v792_v15, %v366_v40  ;;  %1663 = vmatpush3.bf16.msra.mxu0 %v1743_v2 }
 0x26d   :  { %v816_v22 = vadd.f32 %v815_v18, %v801_v10  ;;  %v821_v23 = vrot.slane %v802_v19, 4  ;;  %1664 = vmatprep.subr.bf16.mxu0 %v1744_v3  ;;  %v964_v10 = vrot.slane %v2205_v6, 6  ;;  %v963_v18 = vsel %vm862_vm4, %v962_v7, %v2211_v8 }
 0x26e   :  { %v804_v24 = vadd.f32 %v803_v20, %v799_v12  ;;  %v809_v25 = vrot.slane %v800_v21, 4  ;;  %v1944_v12 = vmov 1966171168  }
 0x26f   :  { %v817_v26 = vrot.slane %v816_v22, 2  ;;  %v822_v27 = vadd.f32 %v821_v23, %v802_v19  ;;  %v972_v15 = vunpack.c.l.s4 %v1944_v12  ;;  %v966_v19 = vrot.slane %v2216_v9, 5 }
 0x270   :  { %v805_v28 = vrot.slane %v804_v24, 2  ;;  %v810_v29 = vadd.f32 %v809_v25, %v800_v21  ;;  %1665 = vmatpush3.bf16.msra.mxu0 %v1744_v3  ;;  %v965_v20 = vsel %vm864_vm5, %v964_v10, %v963_v18 }
 0x271   :  { %v818_v30 = vadd.f32 %v817_v26, %v816_v22  ;;  %v823_v31 = vrot.slane %v822_v27, 2  ;;  %1666 = vmatprep.subr.bf16.mxu0 %v1745_v4  ;;  %v973_v21 = vunpack.c.0.s8 %v972_v15  ;;  %v1474_v22 = vld [vmem:[%s2321_s10] ss:$0 sm:$0xff] }
 0x272   :  { %v806_v34 = vadd.f32 %v805_v28, %v804_v24  ;;  %v811_v35 = vrot.slane %v810_v29, 2  ;;  %v967_v24 = vsel %vm866_vm6, %v966_v19, %v965_v20 }
 0x273   :  { %v819_v36 = vrot.slane %v818_v30, 1  ;;  %v824_v37 = vadd.f32 %v823_v31, %v822_v27  ;;  %v2228_v26 = vsub.s32 %v973_v21, %v2108_v13 }
 0x274   :  { %v807_v32 = vrot.slane %v806_v34, 1  ;;  %v812_v38 = vadd.f32 %v811_v35, %v810_v29  ;;  %1667 = vmatpush3.bf16.msra.mxu0 %v1745_v4 }
 0x275   :  { %v820_v39 = vadd.f32 %v819_v36, %v818_v30  ;;  %v825_v42 = vrot.slane %v824_v37, 1 }
 0x276   :  { %v808_v43 = vadd.f32 %v807_v32, %v806_v34  ;;  %v813_v40 = vrot.slane %v812_v38, 1 }
 0x277   :  { %v826_v44 = vadd.f32 %v825_v42, %v824_v37  ;;  %v829_v47 = vpack.c.bf16 %v820_v39, %v820_v39 }
 0x278   :  { %v827_v45 = vpack.c.bf16 %v808_v43, %v808_v43  ;;  %v814_v46 = vadd.f32 %v813_v40, %v812_v38 }
 0x279   :  { %v830_v49 = vpack.c.bf16 %v826_v44, %v826_v44  ;;  %v860_v54 = vunpack.c.l.b16 %v829_v47 }
 0x27a   :  { %v828_v48 = vpack.c.bf16 %v814_v46, %v814_v46  ;;  %v858_v50 = vunpack.c.l.b16 %v827_v45 }
 0x27b   :  { %v861_v55 = vunpack.c.l.b16 %v830_v49  ;;  %v1748_v49 = vld [vmem:[#allocation14 + $0x50] sm:$0xff]  }
 0x27c   :  { %v859_v53 = vunpack.c.l.b16 %v828_v48 }
 0x27e   :  { %v863_v56 = vsel %vm862_vm4, %v859_v53, %v858_v50  ;;  %v1751_v50 = vld [vmem:[#allocation14 + $0x68] sm:$0xff]   ;;  %v1752_v53 = vld [vmem:[#allocation14 + $0x70] sm:$0xff]  }
 0x27f   :  { %v865_v57 = vsel %vm864_vm5, %v860_v54, %v863_v56  ;;  %v1753_v54 = vld [vmem:[#allocation14 + $0x78] sm:$0xff]  }
 0x280   :  { %v867_v59 = vsel %vm866_vm6, %v861_v55, %v865_v57  ;;  %v1484_v55 = vld [vmem:[%s2319_s8 + $0x1] ss:$0 sm:$0xff]  ;;  %s1369_s8 = sld [smem:[#allocation4]] }
 0x281   :  { %v868_v60 = vpack.c.b16 %v867_v59, %v867_v59 }
 0x283   :  { %1649 = vmatmul.mubr.bf16.vlgmr.msra.gmra.mrb[24].mxu1 %v868_v60 }
 0x284   :  { %1688 = vmatprep.mubr.msk.bf16.mxu1 %vm1943_vm1, %v1942_v11 }
 0x356   :  { %v952_v23 = vpop.f32.mrb[24].mxu1 }
 0x357   :  { %v953_v25 = vadd.f32 %v1474_v22, %v952_v23  ;;  %v1650_v27 = vpop.f32.mrb[25].mxu1 }
 0x358   :  { %v955_v28 = vpop.f32.mrb[26].mxu1 }
 0x359   :  { %v969_v29 = vadd.f32 %v967_v24, %v953_v25  ;;  %v1651_v30 = vpop.f32.mrb[27].mxu1 }
 0x35b   :  { %v977_v31 = vrot.slane %v969_v29, %v2228_v26 }
 0x35d   :  { %v978_v34 = vcombine.high %v977_v31, %v977_v31  ;;  %v985_v35 = vrot.slane %v977_v31, %v2228_v26 }
 0x35f   :  { %v992_v36 = vrot.slane %v978_v34, %v2228_v26  ;;  %v993_v37 = vcombine.high %v985_v35, %v985_v35  ;;  %v998_v32 = vrot.slane %v985_v35, %v2111_v14 }
 0x361   :  { %v994_v38 = vcombine.high %v992_v36, %v992_v36  ;;  %v1006_v39 = vrot.slane %v993_v37, %v2111_v14  ;;  %v1002_v42 = vrot.slane %v992_v36, %v2111_v14  ;;  %v2237_v43 = vadd.f32 %v998_v32, %v2135_v51  ;;  %v1746_v51 = vld [vmem:[#allocation14 + $0x40] sm:$0xff]  }
 0x362   :  { %1673 = vmatpush3.bf16.msra.mxu1 %v1746_v51 }
 0x363   :  { %v2240_v40 = vadd.f32 %v1002_v42, %v2137_v52  ;;  %v1010_v44 = vrot.slane %v994_v38, %v2111_v14  ;;  %v2246_v46 = vadd.f32 %v1006_v39, %v2163_v16  ;;  %1674 = vmatprep.subr.bf16.mxu1 %v1942_v11  ;;  %v1747_v52 = vld [vmem:[#allocation14 + $0x48] sm:$0xff]   ;;  %v1749_v16 = vld [vmem:[#allocation14 + $0x58] sm:$0xff]  }
 0x365   :  { %v1019_v45 = vpack.c.bf16 %v2240_v40, %v2237_v43  ;;  %v2249_v47 = vadd.f32 %v1010_v44, %v2165_v17  ;;  %v1750_v17 = vld [vmem:[#allocation14 + $0x60] sm:$0xff]  }
 0x366   :  { %1675 = vmatpush3.bf16.msra.mxu1 %v1747_v52 }
 0x367   :  { %1668 = vmatprep.mubr.bf16.mxu0 %v1019_v45  ;;  %v1020_v48 = vpack.c.bf16 %v2249_v47, %v2246_v46  ;;  %1676 = vmatprep.subr.bf16.mxu1 %v1942_v11 }
 0x369   :  { %1669 = vmatmul.mubr.bf16.vlgmr.msra.gmra.mrb[20].mxu0 %v1020_v48 }
 0x36a   :  { %1677 = vmatpush3.bf16.msra.mxu1 %v1748_v49 }
 0x36b   :  { %1678 = vmatprep.subr.bf16.mxu1 %v1942_v11 }
 0x36e   :  { %1679 = vmatpush3.bf16.msra.mxu1 %v1749_v16 }
 0x36f   :  { %1680 = vmatprep.subr.bf16.mxu1 %v1942_v11 }
 0x372   :  { %1681 = vmatpush3.bf16.msra.mxu1 %v1750_v17 }
 0x373   :  { %1682 = vmatprep.subr.bf16.mxu1 %v1942_v11 }
 0x376   :  { %1683 = vmatpush3.bf16.msra.mxu1 %v1751_v50 }
 0x377   :  { %1684 = vmatprep.subr.bf16.mxu1 %v1942_v11 }
 0x37a   :  { %1685 = vmatpush3.bf16.msra.mxu1 %v1752_v53 }
 0x37b   :  { %1686 = vmatprep.subr.bf16.mxu1 %v1942_v11 }
 0x37e   :  { %1687 = vmatpush3.bf16.msra.mxu1 %v1753_v54 }
 0x43c   :  { %v1670_v56 = vpop.f32.mrb[20].mxu0 }
 0x43d   :  { %v1137_v57 = vadd.f32 %v1670_v56, %v1484_v55  ;;  %v1128_v59 = vpop.f32.mrb[21].mxu0  ;;  %v1309_v56 = vrot.slane %v2211_v8, 1 }
 0x43e   :  { %v1129_v60 = vadd.f32 %v1484_v55, %v1128_v59  ;;  %v1671_v62 = vpop.f32.mrb[22].mxu0 }
 0x43f   :  { %v1145_v63 = vmax.f32 %v1137_v57, 0.0  ;;  %v1140_v0 = vadd.f32 %v1671_v62, %v1484_v55  ;;  %v1131_v1 = vpop.f32.mrb[23].mxu0  ;;  %v1311_v57 = vrot.slane %v2205_v6, 7  ;;  %v1310_v59 = vsel %vm862_vm4, %v2200_v5, %v1309_v56 }
 0x440   :  { %v1143_v2 = vmax.f32 %v1129_v60, 0.0  ;;  %v1132_v3 = vadd.f32 %v1484_v55, %v1131_v1  ;;  %v1313_v60 = vrot.slane %v2216_v9, 6 }
 0x441   :  { %v1153_v4 = vmul.f32 %v1145_v63, %v2183_v41  ;;  %v1146_v7 = vmax.f32 %v1140_v0, 0.0  ;;  %v1312_v62 = vsel %vm864_vm5, %v1311_v57, %v1310_v59  ;;  %v1494_v63 = vld [vmem:[%s2321_s10 + $0x1] ss:$0 sm:$0xff]  ;;  %s1945_s10 = smov [#allocation16]  }
 0x442   :  { %v1151_v10 = vmul.f32 %v1143_v2, %v2181_v33  ;;  %v1144_v12 = vmax.f32 %v1132_v3, 0.0  ;;  %v1314_v8 = vsel %vm866_vm6, %v1313_v60, %v1312_v62  ;;  %s1433_s14 = sshll.u32 %s1945_s10, 4  ;;  %s1434_s14 = int_to_ptr.vmem [resolvable:$true] %s1433_s14 }
 0x443   :  { %v1167_v15 = vrot.slane %v1153_v4, 4  ;;  %v1154_v18 = vmul.f32 %v1146_v7, %v2195_v61  ;;  %v1383_v7 = vstv %s1504_s29  ;;  %s1896_s0 = scalar_lea.vmem %s1434_s14, 64  ;;  %p1901_p10 = scmp.lt.s32.totalorder %s1434_s14, %s1434_s14 }
 0x444   :  { %v1155_v19 = vrot.slane %v1151_v10, 4  ;;  %v1152_v20 = vmul.f32 %v1144_v12, %v2185_v58  ;;  %vm1384_vm8 = vcmp.lt.s32.totalorder %v2108_v13, %v1383_v7  ;;  %p1897_p9 = scmp.ne.s32.totalorder %s1434_s14, %s1896_s0  ;;  %p1902_p11 = scmp.lt.s32.totalorder %s1896_s0, %s1896_s0 }
 0x445   :  { %v1168_v21 = vadd.f32 %v1167_v15, %v1153_v4  ;;  %v1173_v22 = vrot.slane %v1154_v18, 4  ;;  %v1370_v4 = vstv %s1369_s8 }
 0x446   :  { %v1156_v23 = vadd.f32 %v1155_v19, %v1151_v10  ;;  %v1161_v24 = vrot.slane %v1152_v20, 4  ;;  %v1396_v10 = vstv %s1506_s2  ;;  %vm1371_vm7 = vcmp.lt.s32.totalorder %v2108_v13, %v1370_v4  ;;  %p1903_p12 = por %p1902_p11, %p1901_p10 }
 0x447   :  { %v1169_v25 = vrot.slane %v1168_v21, 2  ;;  %v1174_v27 = vadd.f32 %v1173_v22, %v1154_v18  ;;  %v1409_v18 = vstv %s1508_s28  ;;  %vm1397_vm9 = vcmp.lt.s32.totalorder %v2108_v13, %v1396_v10 }
 0x448   :  { %v1157_v28 = vrot.slane %v1156_v23, 2  ;;  %v1162_v29 = vadd.f32 %v1161_v24, %v1152_v20  ;;  %v1503_v22 = vsel %vm1371_vm7, 1.0, %v1942_v11  ;;  %vm1410_vm10 = vcmp.lt.s32.totalorder %v2108_v13, %v1409_v18  ;;  %p1904_p13 = pnand %p1903_p12, %p1897_p9 }
 0x449   :  { %v1170_v30 = vadd.f32 %v1169_v25, %v1168_v21  ;;  %v1175_v41 = vrot.slane %v1174_v27, 2  ;;  %v1509_v13 = vsel %vm1410_vm10, 1.0, %v1942_v11 }
 0x44a   :  { %v1158_v31 = vadd.f32 %v1157_v28, %v1156_v23  ;;  %v1163_v34 = vrot.slane %v1162_v29, 2  ;;  %v1505_v28 = vsel %vm1384_vm8, 1.0, %v1942_v11 }
 0x44b   :  { %v1171_v33 = vrot.slane %v1170_v30, 1  ;;  %v1176_v35 = vadd.f32 %v1175_v41, %v1174_v27 }
 0x44c   :  { %v1159_v36 = vrot.slane %v1158_v31, 1  ;;  %v1164_v37 = vadd.f32 %v1163_v34, %v1162_v29 }
 0x44d   :  { %v1172_v61 = vadd.f32 %v1171_v33, %v1170_v30  ;;  %v1177_v32 = vrot.slane %v1176_v35, 1 }
 0x44e   :  { %v1160_v38 = vadd.f32 %v1159_v36, %v1158_v31  ;;  %v1165_v58 = vrot.slane %v1164_v37, 1 }
 0x44f   :  { %v1178_v39 = vadd.f32 %v1177_v32, %v1176_v35  ;;  %v1181_v45 = vpack.c.bf16 %v1172_v61, %v1172_v61 }
 0x450   :  { %v1179_v42 = vpack.c.bf16 %v1160_v38, %v1160_v38  ;;  %v1166_v44 = vadd.f32 %v1165_v58, %v1164_v37 }
 0x451   :  { %v1182_v48 = vpack.c.bf16 %v1178_v39, %v1178_v39  ;;  %v1214_v16 = vunpack.c.l.b16 %v1181_v45 }
 0x452   :  { %v1180_v51 = vpack.c.bf16 %v1166_v44, %v1166_v44  ;;  %v1212_v52 = vunpack.c.l.b16 %v1179_v42 }
 0x453   :  { %v1215_v17 = vunpack.c.l.b16 %v1182_v48 }
 0x454   :  { %v1213_v49 = vunpack.c.l.b16 %v1180_v51 }
 0x456   :  { %v1216_v50 = vsel %vm862_vm4, %v1213_v49, %v1212_v52 }
 0x457   :  { %v1217_v53 = vsel %vm864_vm5, %v1214_v16, %v1216_v50 }
 0x458   :  { %v1218_v54 = vsel %vm866_vm6, %v1215_v17, %v1217_v53 }
 0x459   :  { %v1219_v55 = vpack.c.b16 %v1218_v54, %v1218_v54 }
 0x45b   :  { %1689 = vmatmul.mubr.bf16.vlgmr.msra.gmra.mrb[28].mxu1 %v1219_v55 }
 0x52e   :  { %v1303_v0 = vpop.f32.mrb[28].mxu1 }
 0x52f   :  { %v1304_v1 = vadd.f32 %v1494_v63, %v1303_v0  ;;  %v1690_v6 = vpop.f32.mrb[29].mxu1 }
 0x530   :  { %v1306_v2 = vpop.f32.mrb[30].mxu1 }
 0x531   :  { %v1316_v3 = vadd.f32 %v1314_v8, %v1304_v1  ;;  %v1691_v5 = vpop.f32.mrb[31].mxu1 }
 0x533   :  { %v1324_v9 = vrot.slane %v1316_v3, %v2228_v26 }
 0x535   :  { %v1325_v12 = vcombine.high %v1324_v9, %v1324_v9  ;;  %v1332_v15 = vrot.slane %v1324_v9, %v2228_v26 }
 0x537   :  { %v1339_v19 = vrot.slane %v1325_v12, %v2228_v26  ;;  %v1340_v20 = vcombine.high %v1332_v15, %v1332_v15  ;;  %v1345_v21 = vrot.slane %v1332_v15, %v2111_v14  ;;  %v1507_v26 = vsel %vm1397_vm9, 1.0, %v1942_v11 }
 0x539   :  { %v1341_v23 = vcombine.high %v1339_v19, %v1339_v19  ;;  %v1349_v24 = vrot.slane %v1339_v19, %v2111_v14  ;;  %v1353_v25 = vrot.slane %v1340_v20, %v2111_v14  ;;  %v1362_v27 = vadd.f32 %v1345_v21, %v2237_v43 }
 0x53b   :  { %v1357_v29 = vrot.slane %v1341_v23, %v2111_v14  ;;  %v1363_v30 = vadd.f32 %v1349_v24, %v2240_v40  ;;  %v1364_v41 = vadd.f32 %v1353_v25, %v2246_v46  ;;  %v1374_v31 = vmul.f32 %v1503_v22, %v1362_v27 }
 0x53d   :  { %v1365_v34 = vadd.f32 %v1357_v29, %v2249_v47  ;;  %v1375_v33 = vrot.slane %v1374_v31, 4  ;;  %v1387_v35 = vmul.f32 %v1505_v28, %v1363_v30  ;;  %v1400_v36 = vmul.f32 %v1507_v26, %v1364_v41 }
 0x53f   :  { %v1376_v37 = vadd.f32 %v1375_v33, %v1374_v31  ;;  %v1388_v43 = vrot.slane %v1387_v35, 4  ;;  %v1401_v61 = vrot.slane %v1400_v36, 4  ;;  %v1413_v32 = vmul.f32 %v1509_v13, %v1365_v34 }
 0x541   :  { %v1377_v38 = vrot.slane %v1376_v37, 2  ;;  %v1389_v58 = vadd.f32 %v1388_v43, %v1387_v35  ;;  %v1402_v39 = vadd.f32 %v1401_v61, %v1400_v36  ;;  %v1414_v14 = vrot.slane %v1413_v32, 4 }
 0x543   :  { %v1378_v42 = vadd.f32 %v1377_v38, %v1376_v37  ;;  %v1390_v40 = vrot.slane %v1389_v58, 2  ;;  %v1403_v44 = vrot.slane %v1402_v39, 2  ;;  %v1415_v46 = vadd.f32 %v1414_v14, %v1413_v32 }
 0x545   :  { %v1379_v45 = vrot.slane %v1378_v42, 1  ;;  %v1391_v48 = vadd.f32 %v1390_v40, %v1389_v58  ;;  %v1404_v11 = vadd.f32 %v1403_v44, %v1402_v39  ;;  %v1416_v51 = vrot.slane %v1415_v46, 2 }
 0x547   :  { %v1392_v47 = vrot.slane %v1391_v48, 1  ;;  %v1405_v52 = vrot.slane %v1404_v11, 1  ;;  %v1417_v49 = vadd.f32 %v1416_v51, %v1415_v46  ;;  %v1380_v16 = vadd.f32 %v1379_v45, %v1378_v42 }
 0x549   :  { %v1393_v17 = vadd.f32 %v1392_v47, %v1391_v48  ;;  %v1406_v50 = vadd.f32 %v1405_v52, %v1404_v11  ;;  %v1418_v53 = vrot.slane %v1417_v49, 1 }
 0x54b   :  { %v1419_v54 = vadd.f32 %v1418_v53, %v1417_v49  ;;  %v1421_v55 = vsel %vm1420_vm11, %v1380_v16, %v1393_v17 }
 0x54c   :  { %v1423_v56 = vsel %vm1422_vm12, %v1421_v55, %v1406_v50 }
 0x54d   :  { %v1425_v57 = vsel %vm1424_vm13, %v1423_v56, %v1419_v54 }
 0x54e   :  { %1426 = vst [vmem:[#allocation16] sm:$0xf] %v1425_v57 }
 0x54f   :  { %1907 = shalt.err (!%p1904_p13)
}
 0x550   :  { %s1908_s24 = scalar_lea.hbm %s2322_s11, 64 }
 0x551   :  { %p1909_p0 = scmp.ne.s32.totalorder %s2322_s11, %s1908_s24  ;;  %p1912_p1 = scmp.lt.u32.totalorder %s1908_s24, %s2322_s11 }
 0x553   :  { %p1914_p2 = pnand %p1912_p1, %p1909_p0 }
 0x555   :  { %1917 = shalt.err (!%p1914_p2)
}
 0x556   :  { %1436 = dma.vmem_to_hbm [thread:$0]  %s1434_s14, 64, %s2322_s11, [#allocation7]  }
 0x557   :  { %1928 = dma.done.wait [#allocation7], 64  }
 0x558   :  { %1929 = vsyncadd [#allocation7], 4294967232 }
 0x559   :  { %1440 = vsyncpa [#allocation6], 1 }
 0x55a   :  { %1441 = vsyncpa [#allocation9], 1 }
 0x55b   :  { %1442 = vsyncpa [#allocation12], 1 }
 0x55c   :  { %1443 = vsyncpa [#allocation15], 1 }
 0x55d   :  { %1444 = vsyncpa [#allocation7], 1 }

</bundles_post_ra>
